<compile_context>
chip_gen: v7x
topology: tpu7x:2x2x1
jax: 0.10.0
libtpu: 0.0.40
codegen_flags: <defaults>
</compile_context>

<pallas_src>
import functools

import jax
import jax.numpy as jnp
from jax.experimental import pallas as pl
from jax.experimental.pallas import tpu as pltpu


def round_up(v, m):
    return ((v + m - 1) // m) * m


def pad2(a, rows, cols):
    return jnp.pad(a, ((0, rows - a.shape[0]), (0, cols - a.shape[1])))


# ----------------------------------------------------------------------------
# Pallas kernel: one fused GCN layer, tiled over (row tiles i, K tiles k)
#   out = A_hat @ (X @ W) + b   (transform_first)   or
#   out = (A_hat @ X) @ W + b   (aggregate_first)
# ----------------------------------------------------------------------------
def gcn_layer_kernel(a_ref, x_ref, w_ref, b_ref, o_ref, acc_ref,
                     *, apply_relu, transform_first):
    k = pl.program_id(1)

    @pl.when(k == 0)
    def _():
        acc_ref[...] = jnp.zeros_like(acc_ref)

    if transform_first:
        # feature transform on the K tile of X (narrow output width), then
        # aggregate: both matmuls bf16 x bf16 -> f32 on the MXU.
        h = jnp.dot(x_ref[...], w_ref[...], preferred_element_type=jnp.float32)
        acc_ref[...] += jnp.dot(a_ref[...], h.astype(jnp.bfloat16),
                                preferred_element_type=jnp.float32)
    else:
        # aggregate at the (narrower) input feature width
        acc_ref[...] += jnp.dot(a_ref[...], x_ref[...],
                                preferred_element_type=jnp.float32)

    @pl.when(k == pl.num_programs(1) - 1)
    def _():
        acc = acc_ref[...]
        if not transform_first:
            acc = jnp.dot(acc.astype(jnp.bfloat16), w_ref[...],
                          preferred_element_type=jnp.float32)
        y = acc + b_ref[...]            # bias broadcast over node rows
        if apply_relu:
            y = jnp.maximum(y, 0.0)
        o_ref[...] = y.astype(o_ref.dtype)


def gcn_layer(a_p, x_p, w_p, b_p, *, apply_relu, transform_first,
              tm, tk, out_dtype):
    """a_p: [Np,Np] bf16, x_p: [Np,Fin_p] bf16, w_p: [Fin_p,Fout_p] bf16,
    b_p: [1,Fout_p] f32.  All dims padded: Np % tm == Np % tk == 0,
    Fin_p/Fout_p multiples of 128 (lane-dense)."""
    np_ = a_p.shape[0]
    fin_p = x_p.shape[1]
    fout_p = w_p.shape[1]
    agg_w = fout_p if transform_first else fin_p

    kern = functools.partial(gcn_layer_kernel,
                             apply_relu=apply_relu,
                             transform_first=transform_first)

    flops = 2 * np_ * np_ * agg_w + 2 * np_ * fin_p * fout_p
    bytes_accessed = (np_ * np_ * 2          # A_hat (bf16)
                      + np_ * fin_p * 2      # X     (bf16)
                      + fin_p * fout_p * 2   # W     (bf16)
                      + fout_p * 4           # b     (f32)
                      + np_ * fout_p * jnp.dtype(out_dtype).itemsize)

    return pl.pallas_call(
        kern,
        out_shape=jax.ShapeDtypeStruct((np_, fout_p), out_dtype),
        grid_spec=pltpu.PrefetchScalarGridSpec(
            num_scalar_prefetch=0,
            grid=(np_ // tm, np_ // tk),
            in_specs=[
                pl.BlockSpec((tm, tk), lambda i, k: (i, k)),        # A tile
                pl.BlockSpec((tk, fin_p), lambda i, k: (k, 0)),     # X K-tile
                pl.BlockSpec((fin_p, fout_p), lambda i, k: (0, 0)),  # W (resident)
                pl.BlockSpec((1, fout_p), lambda i, k: (0, 0)),      # bias
            ],
            out_specs=pl.BlockSpec((tm, fout_p), lambda i, k: (i, 0)),
            scratch_shapes=[pltpu.VMEM((tm, agg_w), jnp.float32)],
        ),
        compiler_params=pltpu.CompilerParams(
            dimension_semantics=("parallel", "arbitrary"),
            vmem_limit_bytes=32 * 1024 * 1024,
        ),
        cost_estimate=pl.CostEstimate(flops=flops, transcendentals=0,
                                      bytes_accessed=bytes_accessed),
    )(a_p, x_p, w_p, b_p)


# ----------------------------------------------------------------------------
# Glue: normalized adjacency from edge_index (plain JAX, not the hot path)
# ----------------------------------------------------------------------------
def build_norm_adj(edge_index, num_nodes):
    src, dst = edge_index[0], edge_index[1]
    a = jnp.zeros((num_nodes, num_nodes), jnp.float32).at[dst, src].add(1.0)
    a = a + jnp.eye(num_nodes, dtype=jnp.float32)           # add self loops
    deg = a.sum(axis=1)
    dinv = jnp.where(deg > 0, 1.0 / jnp.sqrt(deg), 0.0)
    return dinv[:, None] * a * dinv[None, :]                 # D^-1/2 (A+I) D^-1/2


# ----------------------------------------------------------------------------
# AdaGCNBase forward (encoder only, as in the PyTorch module's forward)
# ----------------------------------------------------------------------------
def ada_gcn_base_forward(x, edge_index, params, *, tile_n=256):
    """params: list of (W [F_in, F_out], b [F_out]) per GCN layer."""
    n, in_dim = x.shape
    hid_dim = params[-1][0].shape[1]
    num_layers = len(params)

    a_hat = build_norm_adj(edge_index, n)
    np_ = round_up(n, tile_n)
    # pad + bf16-cast A_hat once (padded rows/cols are zero -> real rows exact)
    a_p = pad2(a_hat, np_, np_).astype(jnp.bfloat16)

    h = pad2(x, np_, round_up(in_dim, 128))
    for i, (w, b) in enumerate(params):
        fin, fout = w.shape
        fin_p, fout_p = round_up(fin, 128), round_up(fout, 128)
        w_p = pad2(w, fin_p, fout_p).astype(jnp.bfloat16)
        b_p = jnp.pad(b, (0, fout_p - fout)).reshape(1, fout_p).astype(jnp.float32)
        last = i == num_layers - 1
        h = gcn_layer(
            a_p, h.astype(jnp.bfloat16), w_p, b_p,
            apply_relu=not last,                      # ReLU on all but last layer
            transform_first=(fout_p <= fin_p),        # aggregate at narrower width
            tm=tile_n, tk=tile_n,
            out_dtype=jnp.float32 if last else jnp.bfloat16,
        )
        # dropout between layers is identity in eval mode
    return h[:n, :hid_dim]


def init_params(key, in_dim, hid_dim, num_layers):
    params = []
    dims = [in_dim] + [hid_dim] * num_layers
    for i in range(num_layers):
        key, kw = jax.random.split(key)
        fan_in, fan_out = dims[i], dims[i + 1]
        scale = jnp.sqrt(6.0 / (fan_in + fan_out))
        w = jax.random.uniform(kw, (fan_in, fan_out), jnp.float32, -scale, scale)
        b = jnp.zeros((fan_out,), jnp.float32)
        params.append((w, b))
    return params


# ----------------------------------------------------------------------------
# Reference (pure JAX) mirroring the kernel's bf16 input casts & matmul order
# ----------------------------------------------------------------------------
def reference_forward(x, edge_index, params):
    a_b = build_norm_adj(edge_index, x.shape[0])
    a_b = a_b.astype(jnp.bfloat16).astype(jnp.float32)
    h = x
    for i, (w, b) in enumerate(params):
        fin_p, fout_p = round_up(w.shape[0], 128), round_up(w.shape[1], 128)
        h_b = h.astype(jnp.bfloat16).astype(jnp.float32)
        w_b = w.astype(jnp.bfloat16).astype(jnp.float32)
        if fout_p <= fin_p:   # transform-first
            t = (h_b @ w_b).astype(jnp.bfloat16).astype(jnp.float32)
            y = a_b @ t + b
        else:                 # aggregate-first
            t = (a_b @ h_b).astype(jnp.bfloat16).astype(jnp.float32)
            y = t @ w_b + b
        if i < len(params) - 1:
            y = jnp.maximum(y, 0.0)
        h = y
    return h


if __name__ == "__main__":
    in_dim, hid_dim, num_layers = 16, 32, 3
    n_nodes = 300   # pads to Np=512 -> a 2x2 grid of 256-wide tiles

    key = jax.random.PRNGKey(0)
    key, kx = jax.random.split(key)
    x = jax.random.normal(kx, (n_nodes, in_dim), jnp.float32)

    # deterministic ring graph (bidirectional edges)
    src = jnp.arange(n_nodes, dtype=jnp.int32)
    dst = (src + 1) % n_nodes
    edge_index = jnp.stack(
        [jnp.concatenate([src, dst]), jnp.concatenate([dst, src])], axis=0
    )

    params = init_params(key, in_dim, hid_dim, num_layers)

    out = ada_gcn_base_forward(x, edge_index, params)
    out = jax.block_until_ready(out)

    ref = reference_forward(x, edge_index, params)
    assert out.shape == (n_nodes, hid_dim)
    max_err = float(jnp.max(jnp.abs(out - ref)))
    assert jnp.allclose(out, ref, atol=5e-2, rtol=5e-2), f"max_err={max_err}"

    print("KERNEL_OK")
</pallas_src>

<mosaic_0001>
module attributes {stable_mosaic.version = 11 : i64} {
  func.func @gcn_layer_kernel(%arg0: i32, %arg1: i32, %arg2: memref<256x256xbf16, #tpu.memory_space<vmem>>, %arg3: memref<256x128xbf16, #tpu.memory_space<vmem>>, %arg4: memref<128x128xbf16, #tpu.memory_space<vmem>>, %arg5: memref<1x128xf32, #tpu.memory_space<vmem>>, %arg6: memref<256x128xbf16, #tpu.memory_space<vmem>>, %arg7: memref<256x128xf32, #tpu.memory_space<vmem>>) attributes {dimension_semantics = [#tpu.dimension_semantics<parallel>, #tpu.dimension_semantics<arbitrary>], iteration_bounds = array<i64: 2, 2>, scalar_prefetch = 0 : i64, scratch_operands = 1 : i64, tpu.core_type = #tpu.core_type<tc>, window_params = [{transform_indices = @transform_0, window_bounds = array<i64: 256, 256>}, {transform_indices = @transform_1, window_bounds = array<i64: 256, 128>}, {pipeline_mode = #tpu.pipeline_mode<synchronous>, transform_indices = @transform_2, window_bounds = array<i64: 128, 128>}, {pipeline_mode = #tpu.pipeline_mode<synchronous>, transform_indices = @transform_3, window_bounds = array<i64: 1, 128>}, {transform_indices = @transform_4, window_bounds = array<i64: 256, 128>}]} {
    %c0_i32 = arith.constant 0 : i32
    %0 = arith.cmpi eq, %arg1, %c0_i32 : i32
    %1 = arith.extui %0 : i1 to i32
    %c0_i32_0 = arith.constant 0 : i32
    %2 = arith.cmpi ne, %1, %c0_i32_0 : i32
    scf.if %2 {
      %cst_12 = arith.constant 0.000000e+00 : f32
      %15 = vector.broadcast %cst_12 : f32 to vector<256x128xf32>
      %c0_13 = arith.constant 0 : index
      %c0_14 = arith.constant 0 : index
      %16 = vector.load %arg7[%c0_13, %c0_14] : memref<256x128xf32, #tpu.memory_space<vmem>>, vector<256x128xf32>
      tpu.vector_store %arg7[%c0_13, %c0_14], %15 {strides = array<i32>} : memref<256x128xf32, #tpu.memory_space<vmem>>, vector<256x128xf32>,
    } else {
    }
    %c0 = arith.constant 0 : index
    %c0_1 = arith.constant 0 : index
    %3 = vector.load %arg3[%c0, %c0_1] : memref<256x128xbf16, #tpu.memory_space<vmem>>, vector<256x128xbf16>
    %c0_2 = arith.constant 0 : index
    %c0_3 = arith.constant 0 : index
    %4 = vector.load %arg4[%c0_2, %c0_3] : memref<128x128xbf16, #tpu.memory_space<vmem>>, vector<128x128xbf16>
    %cst = arith.constant dense<0.000000e+00> : vector<256x128xf32>
    %5 = tpu.matmul %3, %4, %cst {dimension_numbers = #tpu.dot_dimension_numbers<[1], [0], [0], [1], [0, 0, 1, 1], [], []>} : vector<256x128xbf16>, vector<128x128xbf16>, vector<256x128xf32> -> vector<256x128xf32>
    %c0_4 = arith.constant 0 : index
    %c0_5 = arith.constant 0 : index
    %6 = vector.load %arg7[%c0_4, %c0_5] : memref<256x128xf32, #tpu.memory_space<vmem>>, vector<256x128xf32>
    %c0_6 = arith.constant 0 : index
    %c0_7 = arith.constant 0 : index
    %7 = vector.load %arg2[%c0_6, %c0_7] : memref<256x256xbf16, #tpu.memory_space<vmem>>, vector<256x256xbf16>
    %8 = arith.truncf %5 : vector<256x128xf32> to vector<256x128xbf16>
    %cst_8 = arith.constant dense<0.000000e+00> : vector<256x128xf32>
    %9 = tpu.matmul %7, %8, %cst_8 {dimension_numbers = #tpu.dot_dimension_numbers<[1], [0], [0], [1], [0, 0, 1, 1], [], []>} : vector<256x256xbf16>, vector<256x128xbf16>, vector<256x128xf32> -> vector<256x128xf32>
    %10 = arith.addf %6, %9 : vector<256x128xf32>
    %c0_9 = arith.constant 0 : index
    %c0_10 = arith.constant 0 : index
    %11 = vector.load %arg7[%c0_9, %c0_10] : memref<256x128xf32, #tpu.memory_space<vmem>>, vector<256x128xf32>
    tpu.vector_store %arg7[%c0_9, %c0_10], %10 {strides = array<i32>} : memref<256x128xf32, #tpu.memory_space<vmem>>, vector<256x128xf32>,
    %c1_i32 = arith.constant 1 : i32
    %12 = arith.cmpi eq, %arg1, %c1_i32 : i32
    %13 = arith.extui %12 : i1 to i32
    %c0_i32_11 = arith.constant 0 : i32
    %14 = arith.cmpi ne, %13, %c0_i32_11 : i32
    scf.if %14 {
      %c0_12 = arith.constant 0 : index
      %c0_13 = arith.constant 0 : index
      %15 = vector.load %arg7[%c0_12, %c0_13] : memref<256x128xf32, #tpu.memory_space<vmem>>, vector<256x128xf32>
      %c0_14 = arith.constant 0 : index
      %c0_15 = arith.constant 0 : index
      %16 = vector.load %arg5[%c0_14, %c0_15] : memref<1x128xf32, #tpu.memory_space<vmem>>, vector<1x128xf32>
      %17 = vector.broadcast %16 : vector<1x128xf32> to vector<256x128xf32>
      %18 = arith.addf %15, %17 : vector<256x128xf32>
      %cst_16 = arith.constant 0.000000e+00 : f32
      %19 = vector.broadcast %cst_16 : f32 to vector<256x128xf32>
      %20 = arith.maximumf %18, %19 : vector<256x128xf32>
      %21 = arith.truncf %20 : vector<256x128xf32> to vector<256x128xbf16>
      %c0_17 = arith.constant 0 : index
      %c0_18 = arith.constant 0 : index
      %22 = vector.load %arg6[%c0_17, %c0_18] : memref<256x128xbf16, #tpu.memory_space<vmem>>, vector<256x128xbf16>
      tpu.vector_store %arg6[%c0_17, %c0_18], %21 {strides = array<i32>} : memref<256x128xbf16, #tpu.memory_space<vmem>>, vector<256x128xbf16>,
    } else {
    }
    return
  }
  func.func @transform_0(%arg0: i32, %arg1: i32) -> (i32, i32) {
    %c0_i32 = arith.constant 0 : i32
    return %arg0, %arg1 : i32, i32
  }
  func.func @transform_1(%arg0: i32, %arg1: i32) -> (i32, i32) {
    %c0_i32 = arith.constant 0 : i32
    %c0_i32_0 = arith.constant 0 : i32
    return %arg1, %c0_i32 : i32, i32
  }
  func.func @transform_2(%arg0: i32, %arg1: i32) -> (i32, i32) {
    %c0_i32 = arith.constant 0 : i32
    %c0_i32_0 = arith.constant 0 : i32
    %c0_i32_1 = arith.constant 0 : i32
    return %c0_i32, %c0_i32_0 : i32, i32
  }
  func.func @transform_3(%arg0: i32, %arg1: i32) -> (i32, i32) {
    %c0_i32 = arith.constant 0 : i32
    %c0_i32_0 = arith.constant 0 : i32
    %c0_i32_1 = arith.constant 0 : i32
    return %c0_i32, %c0_i32_0 : i32, i32
  }
  func.func @transform_4(%arg0: i32, %arg1: i32) -> (i32, i32) {
    %c0_i32 = arith.constant 0 : i32
    %c0_i32_0 = arith.constant 0 : i32
    return %arg0, %c0_i32 : i32, i32
  }
}

</mosaic_0001>

<bundles_post_ra>
// kernel: tpu_custom_call.1
= control target key start
LH: loop header
LB: loop body
LE: loop exit
PB: predicated region body
PF: predicated region fallthrough
CT: control target
= control target key end

     0   :  { %s2978_s0 = inlined_call_operand.hbm [shape: bf16[512,512], index: 0, kind: input, shape index: {}]   ;;  %s2979_s1 = inlined_call_operand.hbm [shape: bf16[512,128], index: 1, kind: input, shape index: {}]   ;;  %s2980_s2 = inlined_call_operand.hbm [shape: bf16[128,128], index: 2, kind: input, shape index: {}]   ;;  %s2981_s3 = inlined_call_operand.vmem [shape: f32[1,128], index: 3, kind: input, shape index: {}]   ;;  %s2982_s4 = inlined_call_operand.hbm [shape: bf16[512,128], index: 4, kind: output, shape index: {}]  }
   0x1   :  { %3005 = sst [smem:[#allocation24_spill]] %s2980_s2 }
   0x2   :  { %3006 = sst [smem:[#allocation25_spill]] %s2981_s3 }
   0x3   :  { %3007 = sst [smem:[#allocation26_spill]] %s2982_s4 }
   0x4   :  { %9 = vsyncpa [#allocation4], 0 }
   0x5   :  { %11 = vsyncpa [#allocation4 + $0x1], 0 }
   0x6   :  { %12 = vsyncpa [#allocation7], 0 }
   0x7   :  { %14 = vsyncpa [#allocation7 + $0x1], 0 }
   0x8   :  { %15 = vsyncpa [#allocation5], 0 }
   0x9   :  { %17 = vsyncpa [#allocation5 + $0x1], 0  ;;  %s2493_s15 = smov 0   ;;  %s2495_s16 = smov 0  }
   0xa   :  { %s2497_s17 = smov 0   ;;  %s2499_s18 = smov 0  }
   0xb   :  { %s2501_s19 = smov 0   ;;  %s2503_s20 = smov 0  }
   0xc   :  { %s2505_s21 = smov 0   ;;  %s2507_s22 = smov 0  }
   0xd   :  { %s2509_s23 = smov 0   ;;  %s2511_s24 = smov 0  }
   0xe   :  { %s2513_s25 = smov 0   ;;  %s2515_s26 = smov 0  }
   0xf   :  { %s2517_s27 = smov 0   ;;  %s2519_s28 = smov 0  }
  0x10 LB: > { %3008 = sst [smem:[#allocation14_spill]] %s2402_s15  ;;  %s2560_s29 = sadd.s32 4294967295, %s2454_s28   ;;  %s2454_s28 = sphi %s2519_s28, %s23_s28   ;;  %s2450_s27 = sphi %s2517_s27, %s3068_s27   ;;  %s2446_s26 = sphi %s2515_s26, %s3067_s26   ;;  %s2442_s25 = sphi %s2513_s25, %s3066_s25   ;;  %s2438_s24 = sphi %s2511_s24, %s3065_s24   ;;  %s2434_s23 = sphi %s2509_s23, %s3064_s23   ;;  %s2430_s22 = sphi %s2507_s22, %s3063_s22   ;;  %s2426_s21 = sphi %s2505_s21, %s3062_s21   ;;  %s2422_s20 = sphi %s2503_s20, %s3061_s20   ;;  %s2418_s19 = sphi %s2501_s19, %s3060_s19   ;;  %s2414_s18 = sphi %s2499_s18, %s3059_s18   ;;  %s2410_s17 = sphi %s2497_s17, %s3058_s17   ;;  %s2406_s16 = sphi %s2495_s16, %s3057_s16   ;;  %s2402_s15 = sphi %s2493_s15, %s3054_s15  }
  0x11   : > { %3009 = sst [smem:[#allocation15_spill]] %s2406_s16  ;;  %s1547_s30 = sadd.s32 4294967294, %s2454_s28  }
  0x12   : > { %3010 = sst [smem:[#allocation16_spill]] %s2438_s24  ;;  %p57_p0 = scmp.ne.s32.totalorder %s2430_s22, %s2426_s21 }
  0x13   : > { %3011 = sst [smem:[#allocation17_spill]] %s2442_s25  ;;  %p2985_p1 = scmp.eq.s32.totalorder %s2560_s29, 0 }
  0x14   : > { %3012 = sst [smem:[#allocation18_spill]] %s2560_s29  ;;  %p83_p2 = scmp.ne.s32.totalorder %s2418_s19, %s2414_s18 }
  0x15   : > { %p2569_p3 = por %p2985_p1, %p57_p0  ;;  %p148_p4 = scmp.ne.s32.totalorder %s2410_s17, %s2406_s16 }
  0x16   : > { %p2577_p5 = por %p83_p2, %p2985_p1  ;;  %p149_p6 = scmp.eq.s32.totalorder %s2560_s29, 3 }
  0x17   : > { %s3013_s6 = scalar_select %p2569_p3, 1, 0 }
  0x18   : > { %s3014_s7 = scalar_select %p2577_p5, 1, 0 }
  0x19   : > { %p154_p7 = scmp.ne.s32.totalorder %s2406_s16, %s2402_s15  ;;  %p155_p8 = scmp.eq.s32.totalorder %s1547_s30, 3 }
  0x1a   : > { %3015 = sst [smem:[#allocation19_spill]] %s3014_s7  ;;  %p2584_p9 = por %p149_p6, %p148_p4 }
  0x1b   : > { %p1548_p10 = scmp.ge.s32.totalorder %s2454_s28, 1  ;;  %p2589_p11 = por %p155_p8, %p154_p7 }
  0x1c   : > { %s3016_s8 = scalar_select %p2584_p9, 1, 0 }
  0x1d   : > { %s3018_s9 = scalar_select %p2589_p11, 1, 0 }
  0x1e   : > { %3017 = sst [smem:[#allocation20_spill]] %s3016_s8  ;;  %p162_p12 = scmp.lt.s32.totalorder %s2454_s28, 5 }
  0x1f   : > { %3019 = sst [smem:[#allocation21_spill]] %s3018_s9  ;;  %s2456_s11 = smov [#allocation8]  }
  0x20   : > { %p2594_p13 = pnand %p1548_p10, %p162_p12  ;;  %s174_s12 = sshll.u32 %s2456_s11, 4  ;;  %s175_s12 = int_to_ptr.vmem [resolvable:$true] %s174_s12 }
  0x21   : > { %s3022_s2 = sld [smem:[#allocation24_spill]] }
  0x22   : > { %s3020_s10 = scalar_select %p2594_p13, 1, 0 }
  0x23   : > { %p2000_p0 = pneg %p2594_p13 }
  0x25   : > { %p2602_p2 = pnand %p2000_p0, %p2985_p1 }
  0x27   : > { %s2212_s21 = scalar_lea.hbm %s3022_s2, 1024  ;;  %p2214_p6 = pneg %p2602_p2 }
  0x28   : > { %p2213_p4 = scmp.ne.s32.totalorder %s3022_s2, %s2212_s21  ;;  %p2219_p10 = scmp.lt.u32.totalorder %s2212_s21, %s3022_s2 }
  0x2a   : > { %p2215_p7 = pnand %p2214_p6, %p2213_p4 }
  0x2c   : > { %p2216_p8 = pneg %p2215_p7 }
  0x2e   : > { %p2221_p12 = pnand %p2219_p10, %p2216_p8 }
  0x30   : > { %2224 = shalt.err (!%p2221_p12)
}
  0x31   : > { %s2225_s15 = scalar_lea.vmem %s175_s12, 1024  ;;  %p2233_p9 = scmp.lt.s32.totalorder %s175_s12, %s175_s12 }
  0x32   : > { %p2226_p0 = scmp.ne.s32.totalorder %s175_s12, %s2225_s15  ;;  %p2234_p5 = scmp.lt.s32.totalorder %s2225_s15, %s2225_s15 }
  0x34   : > { %p2228_p1 = pnand %p2226_p0, %p2214_p6  ;;  %p2235_p3 = por %p2234_p5, %p2233_p9 }
  0x36   : > { %p2229_p11 = pneg %p2228_p1 }
  0x38   : > { %p2236_p13 = pnand %p2235_p3, %p2229_p11 }
  0x3a   : > { %2239 = shalt.err (!%p2236_p13)
}
  0x3b   : > { %s2990_s5 = smov 64   ;;  %s2991_s9 = smov 4  }
  0x3c   : > { %2003 = dma.hbm_to_vmem [thread:$0]  (!%p2602_p2), %s3022_s2, 1024, %s175_s12, [#allocation7], %s2990_s5, %s2990_s5, %s2991_s9  }
  0x3d   : > { %s32_s18 = sadd.s32 1, %s2446_s26  ;;  %s35_s21 = sadd.s32 1, %s2450_s27 }
  0x3e   : > { %p33_p1 = scmp.ge.s32.totalorder %s32_s18, 2  ;;  %s44_s30 = sadd.s32 1, %s2434_s23 }
  0x3f   : > { %p51_p3 = scmp.ne.s32.totalorder %s2434_s23, %s2430_s22  ;;  %p3004_p5 = scmp.eq.s32.totalorder %s2454_s28, 0 }
  0x40   : > { %s3070_s18 = smov (%p33_p1, %s32_s18), 0  ;;  %s3072_s21 = smov (!%p33_p1, %s35_s21), %s2450_s27 }
  0x41   : > { %3023 = sst [smem:[#allocation22_spill]] %s3070_s18  ;;  %s2635_s13 = ssub.s32 %s2446_s26, %s3070_s18 }
  0x42   : > { %p37_p9 = scmp.ge.s32.totalorder %s3072_s21, 2  ;;  %p68_p11 = scmp.eq.s32.totalorder %s2635_s13, 0 }
  0x43   : > { %p2641_p13 = por %p3004_p5, %p51_p3  ;;  %p3003_p2 = scmp.lt.s32.totalorder %s2454_s28, 4 }
  0x44   : > { %s3074_s21 = smov (%p37_p9, %s3072_s21), 0  ;;  %s191_s11 = sand.u32 1, %s2434_s23  }
  0x45   : > { %3025 = sst [smem:[#allocation23_spill]] %s3074_s21  ;;  %s1553_s15 = sshll.u32 %s2446_s26, 1 }
  0x46   : > { %s39_s14 = ssub.s32 %s2450_s27, %s3074_s21  ;;  %s1551_s9 = sshll.u32 %s191_s11, 8 }
  0x47   : > { %s41_s5 = sor.u32 %s2635_s13, %s39_s14  ;;  %p136_p4 = scmp.eq.s32.totalorder %s39_s14, 0 }
  0x48   : > { %p42_p6 = scmp.eq.s32.totalorder %s41_s5, 0  ;;  %s3026_s2 = sadd.s32 1, %s2410_s17 }
  0x49   : > { %s2656_s18 = scalar_select %p136_p4, %s2410_s17, %s3026_s2  }
  0x4a   : > { %s2659_s4 = scalar_select %p42_p6, %s2434_s23, %s44_s30  }
  0x4b   : > { %s1660_s8 = sshll.u32 %s2450_s27, 7  ;;  %s195_s3 = scalar_lea.vmem [#allocation3], %s1551_s9 }
  0x4c   : > { %s202_s25 = sadd.s32 %s1660_s8, %s1553_s15  ;;  %s205_s24 = sshll.u32 %s195_s3, 4  ;;  %s2662_s24 = int_to_ptr.vmem [resolvable:$true] %s205_s24 }
  0x4d   : > { %s1555_s16 = sshll.u32 %s202_s25, 6  ;;  %p2673_p7 = pnand %p3003_p2, %p2641_p13 }
  0x4e   : > { %s2667_s21 = scalar_lea.hbm %s2978_s0, %s1555_s16  ;;  %s2677_s3 = scalar_lea.sflag [#allocation4], %s191_s11 }
  0x4f   : > { %s2240_s25 = scalar_lea.hbm %s2667_s21, 4096  ;;  %p2242_p10 = pneg %p2673_p7 }
  0x50   : > { %p2241_p8 = scmp.ne.s32.totalorder %s2667_s21, %s2240_s25  ;;  %s2245_s7 = scalar_lea.hbm %s2978_s0, 16384 }
  0x51   : > { %p2246_p1 = scmp.lt.u32.totalorder %s2667_s21, %s2978_s0  ;;  %p2247_p3 = scmp.lt.u32.totalorder %s2245_s7, %s2240_s25 }
  0x52   : > { %p2243_p12 = pnand %p2242_p10, %p2241_p8  ;;  %p2249_p13 = scmp.lt.u32.totalorder %s2240_s25, %s2667_s21 }
  0x53   : > { %p2248_p9 = por %p2247_p3, %p2246_p1 }
  0x54   : > { %p2244_p0 = pneg %p2243_p12 }
  0x55   : > { %p2250_p4 = por %p2249_p13, %p2248_p9 }
  0x57   : > { %p2251_p6 = pnand %p2250_p4, %p2244_p0 }
  0x59   : > { %2254 = shalt.err (!%p2251_p6)
}
  0x5a   : > { %s2255_s9 = scalar_lea.vmem %s2662_s24, 4096  ;;  %s2459_s30 = smov [#allocation3]  }
  0x5b   : > { %p2256_p8 = scmp.ne.s32.totalorder %s2662_s24, %s2255_s9  ;;  %s2260_s12 = sshll.u32 %s2459_s30, 4  ;;  %s2261_s12 = int_to_ptr.vmem [resolvable:$false] %s2260_s12 }
  0x5c   : > { %s2262_s11 = scalar_lea.vmem %s2261_s12, 8192  ;;  %p2263_p5 = scmp.lt.s32.totalorder %s2662_s24, %s2261_s12 }
  0x5d   : > { %p2258_p12 = pnand %p2256_p8, %p2242_p10  ;;  %p2264_p1 = scmp.lt.s32.totalorder %s2262_s11, %s2255_s9 }
  0x5f   : > { %p2259_p2 = pneg %p2258_p12  ;;  %p2265_p3 = por %p2264_p1, %p2263_p5 }
  0x61   : > { %p2266_p9 = pnand %p2265_p3, %p2259_p2 }
  0x63   : > { %2269 = shalt.err (!%p2266_p9)
}
  0x64   : > { %s2460_s15 = smov 256   ;;  %s2461_s14 = smov 128  }
  0x65   : > { %s2462_s25 = smov 8   ;;  %s215_s16 = sand.u32 1, %s2454_s28  }
  0x66   : > { %2007 = dma.hbm_to_vmem [thread:$0]  (!%p2673_p7), %s2667_s21, 4096, %s2662_s24, %s2677_s3, %s2460_s15, %s2461_s14, %s2462_s25  }
  0x67   : > { %s70_s29 = sadd.s32 1, %s2422_s20  ;;  %p77_p5 = scmp.ne.s32.totalorder %s2422_s20, %s2418_s19 }
  0x68   : > { %s2712_s7 = scalar_select %p68_p11, %s2422_s20, %s70_s29  }
  0x69   : > { %p3028_p2 = scmp.eq.s32.totalorder %s2454_s28, 0  ;;  %s217_s8 = sand.u32 1, %s2422_s20  }
  0x6a   : > { %s1556_s5 = sshll.u32 %s217_s8, 7  ;;  %s1661_s9 = sshll.u32 %s2446_s26, 11 }
  0x6b   : > { %p79_p10 = por %p77_p5, %p3028_p2  ;;  %s2721_s11 = scalar_lea.hbm %s2979_s1, %s1661_s9 }
  0x6c   : > { %s219_s24 = scalar_lea.vmem [#allocation6], %s1556_s5  ;;  %p3029_p7 = scmp.lt.s32.totalorder %s2454_s28, 4 }
  0x6d   : > { %s226_s21 = sshll.u32 %s219_s24, 4  ;;  %s2731_s2 = scalar_lea.sflag [#allocation7], %s215_s16  ;;  %s2729_s21 = int_to_ptr.vmem [resolvable:$true] %s226_s21 }
  0x6e   : > { %p2725_p0 = pnand %p3029_p7, %p79_p10  ;;  %s2270_s3 = scalar_lea.hbm %s2721_s11, 2048 }
  0x6f   : > { %p2271_p11 = scmp.ne.s32.totalorder %s2721_s11, %s2270_s3  ;;  %s2275_s25 = scalar_lea.hbm %s2979_s1, 4096 }
  0x70   : > { %p2272_p13 = pneg %p2725_p0  ;;  %p2276_p8 = scmp.lt.u32.totalorder %s2721_s11, %s2979_s1 }
  0x71   : > { %p2277_p12 = scmp.lt.u32.totalorder %s2275_s25, %s2270_s3  ;;  %p2279_p3 = scmp.lt.u32.totalorder %s2270_s3, %s2721_s11 }
  0x72   : > { %p2273_p4 = pnand %p2272_p13, %p2271_p11 }
  0x73   : > { %p2278_p1 = por %p2277_p12, %p2276_p8 }
  0x74   : > { %p2274_p6 = pneg %p2273_p4 }
  0x75   : > { %p2280_p9 = por %p2279_p3, %p2278_p1 }
  0x77   : > { %p2281_p5 = pnand %p2280_p9, %p2274_p6 }
  0x79   : > { %2284 = shalt.err (!%p2281_p5)
}
  0x7a   : > { %s2285_s16 = scalar_lea.vmem %s2729_s21, 2048  ;;  %s2463_s5 = smov [#allocation6]  }
  0x7b   : > { %p2286_p2 = scmp.ne.s32.totalorder %s2729_s21, %s2285_s16  ;;  %s2290_s9 = sshll.u32 %s2463_s5, 4  ;;  %s2291_s9 = int_to_ptr.vmem [resolvable:$false] %s2290_s9 }
  0x7c   : > { %s2292_s30 = scalar_lea.vmem %s2291_s9, 4096  ;;  %p2293_p11 = scmp.lt.s32.totalorder %s2729_s21, %s2291_s9 }
  0x7d   : > { %p2288_p10 = pnand %p2286_p2, %p2272_p13  ;;  %p2294_p4 = scmp.lt.s32.totalorder %s2292_s30, %s2285_s16 }
  0x7f   : > { %p2289_p7 = pneg %p2288_p10  ;;  %p2295_p8 = por %p2294_p4, %p2293_p11 }
  0x81   : > { %p2296_p12 = pnand %p2295_p8, %p2289_p7 }
  0x83   : > { %2299 = shalt.err (!%p2296_p12)
}
  0x84   : > { %s3031_s12 = smov 4   ;;  %s3032_s24 = smov 64  }
  0x85   : > { %2010 = dma.hbm_to_vmem [thread:$0]  (!%p2725_p0), %s2721_s11, 2048, %s2729_s21, %s2731_s2, %s3032_s24, %s3032_s24, %s3031_s12  }
  0x86   : > { %p3033_p13 = scmp.ne.s32.totalorder %s3020_s10, 0 }
  0x87   : > { %s240_s3 = sand.u32 (!%p3033_p13), 1, %s2430_s22   ;;  %p3034_p6 = scmp.ne.s32.totalorder (!%p3033_p13), %s3013_s6, 0 }
  0x88   : > { %238 = sbr.rel (%p3033_p13) target bundleno = 844 (0x34c), region = 36  ;;  %s1560_s15 = sshll.u32 (!%p3033_p13), %s240_s3, 8 }
  0x89   : > { %s241_s14 = scalar_lea.sflag (!%p3033_p13), [#allocation4], %s240_s3  ;;  %s2765_s25 = scalar_lea.vmem (!%p3033_p13), [#allocation3], %s1560_s15 }
  0x8f   : > { %2385 = dma.done.wait (%p3034_p6), %s241_s14, 4096  }
  0x90   : > { %2387 = vsyncadd (%p3034_p6), %s241_s14, 4294963200  ;;  %s3035_s13 = sld [smem:[#allocation18_spill]]  ;;  %s3036_s29 = sld [smem:[#allocation19_spill]] }
  0x91   : > { %s251_s11 = sand.u32 1, %s2418_s19  }
  0x92   : > { %s1561_s21 = sshll.u32 %s251_s11, 7 }
  0x93   : > { %s2773_s2 = scalar_lea.vmem [#allocation6], %s1561_s21 }
  0x96   : > { %s249_s8 = sand.u32 1, %s3035_s13   ;;  %p3037_p0 = scmp.ne.s32.totalorder %s3036_s29, 0 }
  0x97   : > { %s250_s10 = scalar_lea.sflag [#allocation7], %s249_s8 }
  0x98   : > { %2389 = dma.done.wait (%p3037_p0), %s250_s10, 2048  }
  0x99   : > { %2391 = vsyncadd (%p3037_p0), %s250_s10, 4294965248  ;;  %p3038_p1 = scmp.eq.s32.totalorder %s3035_s13, 0 }
  0x9b   : > { %2393 = dma.done.wait (%p3038_p1), [#allocation7], 1024   ;;  %p3039_p3 = pmov %p3038_p1 }
  0x9c   : > { %s3040_s6 = sld [smem:[#allocation15_spill]]  ;;  %s3041_s30 = sld [smem:[#allocation16_spill]] }
  0x9d   : > { %2395 = vsyncadd (%p3039_p3), [#allocation7], 4294966272 }
  0xa2   : > { %s284_s16 = sand.u32 1, %s3040_s6   ;;  %p1564_p9 = scmp.ne.s32.totalorder %s3041_s30, 0 }
  0xa3   : > { %s1563_s5 = sshll.u32 %s284_s16, 7  ;;  %v2464_v0 = vmov (!%p1564_p9), 0.0  }
  0xa4   : > { %s2786_s9 = scalar_lea.vmem [#allocation9], %s1563_s5  ;;  %295 = sbr.rel (%p1564_p9) target bundleno = 180 (0xb4), region = 52  ;;  %296 = vst [vmem:[#allocation2] sm:$0xff] (!%p1564_p9), %v2464_v0  ;;  %297 = vst [vmem:[#allocation2 + $0x8] sm:$0xff] (!%p1564_p9), %v2464_v0 }
  0xa5   : > { %298 = vst [vmem:[#allocation2 + $0x10] sm:$0xff] (!%p1564_p9), %v2464_v0  ;;  %299 = vst [vmem:[#allocation2 + $0x18] sm:$0xff] (!%p1564_p9), %v2464_v0 }
  0xa6   : > { %300 = vst [vmem:[#allocation2 + $0x20] sm:$0xff] (!%p1564_p9), %v2464_v0  ;;  %301 = vst [vmem:[#allocation2 + $0x28] sm:$0xff] (!%p1564_p9), %v2464_v0 }
  0xa7   : > { %302 = vst [vmem:[#allocation2 + $0x30] sm:$0xff] (!%p1564_p9), %v2464_v0  ;;  %303 = vst [vmem:[#allocation2 + $0x38] sm:$0xff] (!%p1564_p9), %v2464_v0 }
  0xa8   : > { %304 = vst [vmem:[#allocation2 + $0x40] sm:$0xff] (!%p1564_p9), %v2464_v0  ;;  %305 = vst [vmem:[#allocation2 + $0x48] sm:$0xff] (!%p1564_p9), %v2464_v0 }
  0xa9   : > { %306 = vst [vmem:[#allocation2 + $0x50] sm:$0xff] (!%p1564_p9), %v2464_v0  ;;  %307 = vst [vmem:[#allocation2 + $0x58] sm:$0xff] (!%p1564_p9), %v2464_v0 }
  0xaa   : > { %308 = vst [vmem:[#allocation2 + $0x60] sm:$0xff] (!%p1564_p9), %v2464_v0  ;;  %309 = vst [vmem:[#allocation2 + $0x68] sm:$0xff] (!%p1564_p9), %v2464_v0 }
  0xab   : > { %310 = vst [vmem:[#allocation2 + $0x70] sm:$0xff] %v2464_v0  ;;  %311 = vst [vmem:[#allocation2 + $0x78] sm:$0xff] %v2464_v0 }
  0xac   : > { %312 = vst [vmem:[#allocation2 + $0x80] sm:$0xff] %v2464_v0  ;;  %313 = vst [vmem:[#allocation2 + $0x88] sm:$0xff] %v2464_v0 }
  0xad   : > { %314 = vst [vmem:[#allocation2 + $0x90] sm:$0xff] %v2464_v0  ;;  %315 = vst [vmem:[#allocation2 + $0x98] sm:$0xff] %v2464_v0 }
  0xae   : > { %316 = vst [vmem:[#allocation2 + $0xa0] sm:$0xff] %v2464_v0  ;;  %317 = vst [vmem:[#allocation2 + $0xa8] sm:$0xff] %v2464_v0 }
  0xaf   : > { %318 = vst [vmem:[#allocation2 + $0xb0] sm:$0xff] %v2464_v0  ;;  %319 = vst [vmem:[#allocation2 + $0xb8] sm:$0xff] %v2464_v0 }
  0xb0   : > { %320 = vst [vmem:[#allocation2 + $0xc0] sm:$0xff] %v2464_v0  ;;  %321 = vst [vmem:[#allocation2 + $0xc8] sm:$0xff] %v2464_v0 }
  0xb1   : > { %322 = vst [vmem:[#allocation2 + $0xd0] sm:$0xff] %v2464_v0  ;;  %323 = vst [vmem:[#allocation2 + $0xd8] sm:$0xff] %v2464_v0 }
  0xb2   : > { %324 = vst [vmem:[#allocation2 + $0xe0] sm:$0xff] %v2464_v0  ;;  %325 = vst [vmem:[#allocation2 + $0xe8] sm:$0xff] %v2464_v0 }
  0xb3   : > { %326 = vst [vmem:[#allocation2 + $0xf0] sm:$0xff] %v2464_v0  ;;  %327 = vst [vmem:[#allocation2 + $0xf8] sm:$0xff] %v2464_v0 }
  0xb4 PF: > { %v2140_v1 = vld [vmem:[#allocation8] sm:$0xff]   ;;  %v2141_v2 = vld [vmem:[#allocation8 + $0x8] sm:$0xff]   ;;  %v2142_v3 = vld [vmem:[#allocation8 + $0x10] sm:$0xff]   ;;  %s3042_s12 = sld [smem:[#allocation16_spill]] }
  0xb5   : > { %1926 = vmatprep.subr.bf16.mxu0 %v2140_v1  ;;  %v2143_v4 = vld [vmem:[#allocation8 + $0x18] sm:$0xff]   ;;  %v2148_v5 = vld [vmem:[%s2773_s2] sm:$0xff]   ;;  %v2145_v7 = vld [vmem:[#allocation8 + $0x28] sm:$0xff]  }
  0xb6   : > { %1927 = vmatpush3.bf16.msra.mxu0 %v2140_v1  ;;  %1942 = vmatprep.mubr.bf16.mxu0 %v2148_v5  ;;  %v2144_v6 = vld [vmem:[#allocation8 + $0x20] sm:$0xff]   ;;  %v2146_v8 = vld [vmem:[#allocation8 + $0x30] sm:$0xff]   ;;  %v2147_v9 = vld [vmem:[#allocation8 + $0x38] sm:$0xff]  }
  0xb7   : > { %1928 = vmatprep.subr.bf16.mxu0 %v2141_v2  ;;  %v2149_v10 = vld [vmem:[%s2773_s2 + $0x8] sm:$0xff]   ;;  %v2150_v11 = vld [vmem:[%s2773_s2 + $0x10] sm:$0xff]   ;;  %v2151_v12 = vld [vmem:[%s2773_s2 + $0x18] sm:$0xff]  }
  0xb8   : > { %v2152_v13 = vld [vmem:[%s2773_s2 + $0x20] sm:$0xff]   ;;  %v2153_v14 = vld [vmem:[%s2773_s2 + $0x28] sm:$0xff]   ;;  %v2154_v15 = vld [vmem:[%s2773_s2 + $0x30] sm:$0xff]  }
  0xb9   : > { %v2155_v16 = vld [vmem:[%s2773_s2 + $0x38] sm:$0xff]   ;;  %v2156_v17 = vld [vmem:[%s2773_s2 + $0x40] sm:$0xff]   ;;  %v2157_v18 = vld [vmem:[%s2773_s2 + $0x48] sm:$0xff]  }
  0xba   : > { %1929 = vmatpush3.bf16.msra.mxu0 %v2141_v2  ;;  %v2158_v19 = vld [vmem:[%s2773_s2 + $0x50] sm:$0xff]   ;;  %v2159_v20 = vld [vmem:[%s2773_s2 + $0x58] sm:$0xff]   ;;  %v2160_v21 = vld [vmem:[%s2773_s2 + $0x60] sm:$0xff]   ;;  %p1621_p5 = scmp.ne.s32.totalorder %s3042_s12, 1 }
  0xbb   : > { %1930 = vmatprep.subr.bf16.mxu0 %v2142_v3  ;;  %v2161_v22 = vld [vmem:[%s2773_s2 + $0x68] sm:$0xff]   ;;  %v2162_v23 = vld [vmem:[%s2773_s2 + $0x70] sm:$0xff]   ;;  %v2163_v24 = vld [vmem:[%s2773_s2 + $0x78] sm:$0xff]   ;;  %s3043_s15 = sld [smem:[#allocation25_spill]] (!%p1621_p5) }
  0xbc   : > { %v2166_v25 = vld [vmem:[%s2765_s25 + $0x44] ss:$8 sps:$4 sm:$0xff]  }
  0xbd   : > { %985 = vmatprep.mubr.bf16.mxu1 %v2166_v25  ;;  %v2190_v26 = vld [vmem:[%s2765_s25 + $0x4] ss:$8 sps:$4 sm:$0xff]  }
  0xbe   : > { %1931 = vmatpush3.bf16.msra.mxu0 %v2142_v3  ;;  %v2176_v25 = vld [vmem:[%s2765_s25 + $0x84] ss:$8 sps:$4 sm:$0xff]  }
  0xbf   : > { %1932 = vmatprep.subr.bf16.mxu0 %v2143_v4 }
  0xc2   : > { %1933 = vmatpush3.bf16.msra.mxu0 %v2143_v4 }
  0xc3   : > { %1934 = vmatprep.subr.bf16.mxu0 %v2144_v6 }
  0xc6   : > { %1935 = vmatpush3.bf16.msra.mxu0 %v2144_v6 }
  0xc7   : > { %1936 = vmatprep.subr.bf16.mxu0 %v2145_v7 }
  0xca   : > { %1937 = vmatpush3.bf16.msra.mxu0 %v2145_v7 }
  0xcb   : > { %1938 = vmatprep.subr.bf16.mxu0 %v2146_v8 }
  0xce   : > { %1939 = vmatpush3.bf16.msra.mxu0 %v2146_v8 }
  0xcf   : > { %1940 = vmatprep.subr.bf16.mxu0 %v2147_v9 }
  0xd2   : > { %1941 = vmatpush3.bf16.msra.mxu0 %v2147_v9 }
  0xd5   : > { %1943 = vmatmul.mubr.bf16.vlgmr.msra.gmra.mrb[0].mxu0 %v2149_v10 }
  0xd6   : > { %1946 = vmatprep.mubr.bf16.mxu0 %v2150_v11  ;;  %v2164_v11 = vld [vmem:[%s2765_s25 + $0x40] ss:$8 sps:$4 sm:$0xff]  }
  0xdd   : > { %1947 = vmatmul.mubr.bf16.gmra.mrb[4].mxu0 %v2151_v12  ;;  %v2188_v12 = vld [vmem:[%s2765_s25] ss:$8 sps:$4 sm:$0xff]  }
  0xde   : > { %1950 = vmatprep.mubr.bf16.mxu0 %v2152_v13  ;;  %v2167_v13 = vld [vmem:[%s2765_s25 + $0x54] ss:$8 sps:$4 sm:$0xff]  }
  0xe5   : > { %1951 = vmatmul.mubr.bf16.gmra.mrb[8].mxu0 %v2153_v14  ;;  %v2194_v14 = vld [vmem:[%s2765_s25 + $0x14] ss:$8 sps:$4 sm:$0xff]  }
  0xe6   : > { %1954 = vmatprep.mubr.bf16.mxu0 %v2154_v15  ;;  %v2169_v15 = vld [vmem:[%s2765_s25 + $0x50] ss:$8 sps:$4 sm:$0xff]  }
  0xed   : > { %1955 = vmatmul.mubr.bf16.gmra.mrb[12].mxu0 %v2155_v16  ;;  %v2196_v16 = vld [vmem:[%s2765_s25 + $0x10] ss:$8 sps:$4 sm:$0xff]  }
  0xee   : > { %1958 = vmatprep.mubr.bf16.mxu0 %v2156_v17  ;;  %v2170_v17 = vld [vmem:[%s2765_s25 + $0x64] ss:$8 sps:$4 sm:$0xff]  }
  0xf5   : > { %1959 = vmatmul.mubr.bf16.gmra.mrb[16].mxu0 %v2157_v18  ;;  %v2200_v18 = vld [vmem:[%s2765_s25 + $0x24] ss:$8 sps:$4 sm:$0xff]  }
  0xf6   : > { %1962 = vmatprep.mubr.bf16.mxu0 %v2158_v19  ;;  %v2172_v19 = vld [vmem:[%s2765_s25 + $0x60] ss:$8 sps:$4 sm:$0xff]  }
  0xfd   : > { %1963 = vmatmul.mubr.bf16.gmra.mrb[20].mxu0 %v2159_v20  ;;  %v2202_v20 = vld [vmem:[%s2765_s25 + $0x20] ss:$8 sps:$4 sm:$0xff]  }
  0xfe   : > { %1966 = vmatprep.mubr.bf16.mxu0 %v2160_v21  ;;  %v2173_v21 = vld [vmem:[%s2765_s25 + $0x74] ss:$8 sps:$4 sm:$0xff]  }
 0x105   : > { %1967 = vmatmul.mubr.bf16.gmra.mrb[24].mxu0 %v2161_v22  ;;  %v2206_v22 = vld [vmem:[%s2765_s25 + $0x34] ss:$8 sps:$4 sm:$0xff]  }
 0x106   : > { %1970 = vmatprep.mubr.bf16.mxu0 %v2162_v23  ;;  %v2175_v23 = vld [vmem:[%s2765_s25 + $0x70] ss:$8 sps:$4 sm:$0xff]  }
 0x10d   : > { %1971 = vmatmul.mubr.bf16.gmra.mrb[28].mxu0 %v2163_v24  ;;  %v2208_v24 = vld [vmem:[%s2765_s25 + $0x30] ss:$8 sps:$4 sm:$0xff]  }
 0x10e   : > { %953 = vmatprep.mubr.bf16.mxu0 %v2190_v26  ;;  %v2178_v26 = vld [vmem:[%s2765_s25 + $0x80] ss:$8 sps:$4 sm:$0xff]  }
 0x1a8   : > { %v1944_v27 = vpop.f32.mrb[0].mxu0 }
 0x1a9   : > { %v554_v28 = vpop.f32.mrb[1].mxu0 }
 0x1aa   : > { %v1945_v29 = vpop.f32.mrb[2].mxu0 }
 0x1ab   : > { %v746_v30 = vpack.c.bf16 %v1945_v29, %v1944_v27  ;;  %v557_v31 = vpop.f32.mrb[3].mxu0  ;;  %v2179_v27 = vld [vmem:[%s2765_s25 + $0x94] ss:$8 sps:$4 sm:$0xff]   ;;  %v2182_v29 = vld [vmem:[%s2765_s25 + $0xa4] ss:$8 sps:$4 sm:$0xff]  }
 0x1ac   : > { %v745_v32 = vpack.c.bf16 %v557_v31, %v554_v28  ;;  %v2181_v28 = vld [vmem:[%s2765_s25 + $0x90] ss:$8 sps:$4 sm:$0xff]   ;;  %v2185_v31 = vld [vmem:[%s2765_s25 + $0xb4] ss:$8 sps:$4 sm:$0xff]  }
 0x1b0   : > { %v1948_v33 = vpop.f32.mrb[4].mxu0 }
 0x1b1   : > { %v570_v34 = vpop.f32.mrb[5].mxu0 }
 0x1b2   : > { %v1949_v35 = vpop.f32.mrb[6].mxu0 }
 0x1b3   : > { %v748_v36 = vpack.c.bf16 %v1949_v35, %v1948_v33  ;;  %v573_v37 = vpop.f32.mrb[7].mxu0  ;;  %v2191_v33 = vld [vmem:[%s2765_s25 + $0xc4] ss:$8 sps:$4 sm:$0xff]   ;;  %v2197_v35 = vld [vmem:[%s2765_s25 + $0xd4] ss:$8 sps:$4 sm:$0xff]  }
 0x1b4   : > { %v747_v38 = vpack.c.bf16 %v573_v37, %v570_v34  ;;  %v2193_v34 = vld [vmem:[%s2765_s25 + $0xc0] ss:$8 sps:$4 sm:$0xff]   ;;  %v2203_v37 = vld [vmem:[%s2765_s25 + $0xe4] ss:$8 sps:$4 sm:$0xff]  }
 0x1b8   : > { %v1952_v39 = vpop.f32.mrb[8].mxu0 }
 0x1b9   : > { %v586_v40 = vpop.f32.mrb[9].mxu0 }
 0x1ba   : > { %v1953_v41 = vpop.f32.mrb[10].mxu0 }
 0x1bb   : > { %v750_v42 = vpack.c.bf16 %v1953_v41, %v1952_v39  ;;  %v589_v43 = vpop.f32.mrb[11].mxu0  ;;  %v2209_v39 = vld [vmem:[%s2765_s25 + $0xf4] ss:$8 sps:$4 sm:$0xff]  }
 0x1bc   : > { %v749_v44 = vpack.c.bf16 %v589_v43, %v586_v40  ;;  %v2211_v40 = vld [vmem:[%s2765_s25 + $0xf0] ss:$8 sps:$4 sm:$0xff]   ;;  %v689_v43 = vld [vmem:[#allocation2 + $0x40] sm:$0xff] }
 0x1c0   : > { %v1956_v45 = vpop.f32.mrb[12].mxu0 }
 0x1c1   : > { %v602_v46 = vpop.f32.mrb[13].mxu0 }
 0x1c2   : > { %v1957_v47 = vpop.f32.mrb[14].mxu0 }
 0x1c3   : > { %v752_v48 = vpack.c.bf16 %v1957_v47, %v1956_v45  ;;  %v605_v49 = vpop.f32.mrb[15].mxu0  ;;  %v681_v45 = vld [vmem:[#allocation2] sm:$0xff] }
 0x1c4   : > { %v751_v50 = vpack.c.bf16 %v605_v49, %v602_v46 }
 0x1c8   : > { %v1960_v51 = vpop.f32.mrb[16].mxu0 }
 0x1c9   : > { %v618_v52 = vpop.f32.mrb[17].mxu0 }
 0x1ca   : > { %v1961_v53 = vpop.f32.mrb[18].mxu0 }
 0x1cb   : > { %v754_v54 = vpack.c.bf16 %v1961_v53, %v1960_v51  ;;  %v621_v55 = vpop.f32.mrb[19].mxu0  ;;  %v690_v51 = vld [vmem:[#allocation2 + $0x48] sm:$0xff] }
 0x1cc   : > { %v753_v56 = vpack.c.bf16 %v621_v55, %v618_v52  ;;  %v682_v53 = vld [vmem:[#allocation2 + $0x8] sm:$0xff] }
 0x1ce   : > { %1814 = vmatprep.subr.bf16.mxu0 %v753_v56  ;;  %1974 = vmatprep.subr.bf16.mxu1 %v753_v56 }
 0x1cf   : > { %1815 = vmatpush3.bf16.msra.mxu0 %v745_v32  ;;  %1982 = vmatpush3.bf16.msra.mxu1 %v745_v32  ;;  %v2187_v32 = vld [vmem:[%s2765_s25 + $0xb0] ss:$8 sps:$4 sm:$0xff]  }
 0x1d0   : > { %v1964_v57 = vpop.f32.mrb[20].mxu0  ;;  %1816 = vmatprep.subr.bf16.mxu0 %v754_v54  ;;  %1975 = vmatprep.subr.bf16.mxu1 %v754_v54 }
 0x1d1   : > { %v634_v58 = vpop.f32.mrb[21].mxu0 }
 0x1d2   : > { %v1965_v59 = vpop.f32.mrb[22].mxu0 }
 0x1d3   : > { %v756_v60 = vpack.c.bf16 %v1965_v59, %v1964_v57  ;;  %v637_v61 = vpop.f32.mrb[23].mxu0  ;;  %1817 = vmatpush3.bf16.msra.mxu0 %v746_v30  ;;  %1983 = vmatpush3.bf16.msra.mxu1 %v746_v30  ;;  %v2184_v30 = vld [vmem:[%s2765_s25 + $0xa0] ss:$8 sps:$4 sm:$0xff]  }
 0x1d4   : > { %v755_v62 = vpack.c.bf16 %v637_v61, %v634_v58 }
 0x1d6   : > { %1818 = vmatprep.subr.bf16.mxu0 %v755_v62  ;;  %1976 = vmatprep.subr.bf16.mxu1 %v755_v62 }
 0x1d7   : > { %1819 = vmatpush3.bf16.msra.mxu0 %v747_v38  ;;  %1984 = vmatpush3.bf16.msra.mxu1 %v747_v38  ;;  %v2205_v38 = vld [vmem:[%s2765_s25 + $0xe0] ss:$8 sps:$4 sm:$0xff]  }
 0x1d8   : > { %v1968_v63 = vpop.f32.mrb[24].mxu0  ;;  %1820 = vmatprep.subr.bf16.mxu0 %v756_v60  ;;  %1977 = vmatprep.subr.bf16.mxu1 %v756_v60 }
 0x1d9   : > { %v650_v0 = vpop.f32.mrb[25].mxu0 }
 0x1da   : > { %v1969_v1 = vpop.f32.mrb[26].mxu0 }
 0x1db   : > { %v758_v2 = vpack.c.bf16 %v1969_v1, %v1968_v63  ;;  %v653_v3 = vpop.f32.mrb[27].mxu0  ;;  %1821 = vmatpush3.bf16.msra.mxu0 %v748_v36  ;;  %1985 = vmatpush3.bf16.msra.mxu1 %v748_v36  ;;  %v2199_v36 = vld [vmem:[%s2765_s25 + $0xd0] ss:$8 sps:$4 sm:$0xff]  }
 0x1dc   : > { %v757_v4 = vpack.c.bf16 %v653_v3, %v650_v0  ;;  %v691_v63 = vld [vmem:[#allocation2 + $0x50] sm:$0xff] }
 0x1dd   : > { %v683_v1 = vld [vmem:[#allocation2 + $0x10] sm:$0xff] }
 0x1de   : > { %1822 = vmatprep.subr.bf16.mxu0 %v757_v4  ;;  %1978 = vmatprep.subr.bf16.mxu1 %v757_v4 }
 0x1df   : > { %1823 = vmatpush3.bf16.msra.mxu0 %v749_v44  ;;  %1986 = vmatpush3.bf16.msra.mxu1 %v749_v44 }
 0x1e0   : > { %v1972_v5 = vpop.f32.mrb[28].mxu0  ;;  %1824 = vmatprep.subr.bf16.mxu0 %v758_v2  ;;  %1979 = vmatprep.subr.bf16.mxu1 %v758_v2 }
 0x1e1   : > { %v666_v6 = vpop.f32.mrb[29].mxu0 }
 0x1e2   : > { %v1973_v7 = vpop.f32.mrb[30].mxu0 }
 0x1e3   : > { %v760_v8 = vpack.c.bf16 %v1973_v7, %v1972_v5  ;;  %v669_v9 = vpop.f32.mrb[31].mxu0  ;;  %1825 = vmatpush3.bf16.msra.mxu0 %v750_v42  ;;  %1987 = vmatpush3.bf16.msra.mxu1 %v750_v42  ;;  %v692_v7 = vld [vmem:[#allocation2 + $0x58] sm:$0xff] }
 0x1e4   : > { %v759_v10 = vpack.c.bf16 %v669_v9, %v666_v6  ;;  %v684_v9 = vld [vmem:[#allocation2 + $0x18] sm:$0xff] }
 0x1e6   : > { %1826 = vmatprep.subr.bf16.mxu0 %v759_v10  ;;  %1980 = vmatprep.subr.bf16.mxu1 %v759_v10 }
 0x1e7   : > { %1827 = vmatpush3.bf16.msra.mxu0 %v751_v50  ;;  %1988 = vmatpush3.bf16.msra.mxu1 %v751_v50 }
 0x1e8   : > { %1828 = vmatprep.subr.bf16.mxu0 %v760_v8  ;;  %1981 = vmatprep.subr.bf16.mxu1 %v760_v8 }
 0x1eb   : > { %1829 = vmatpush3.bf16.msra.mxu0 %v752_v48  ;;  %1989 = vmatpush3.bf16.msra.mxu1 %v752_v48 }
 0x1ee   : > { %986 = vmatmul.mubr.bf16.vlgmr.msra.gmra.mrb[0].mxu1 %v2164_v11  ;;  %954 = vmatmul.mubr.bf16.vlgmr.msra.gmra.mrb[32].mxu0 %v2188_v12 }
 0x1ef   : > { %993 = vmatprep.mubr.bf16.mxu1 %v2167_v13  ;;  %961 = vmatprep.mubr.bf16.mxu0 %v2194_v14 }
 0x1f6   : > { %994 = vmatmul.mubr.bf16.gmra.mrb[4].mxu1 %v2169_v15  ;;  %962 = vmatmul.mubr.bf16.gmra.mrb[36].mxu0 %v2196_v16 }
 0x1f7   : > { %1001 = vmatprep.mubr.bf16.mxu1 %v2170_v17  ;;  %969 = vmatprep.mubr.bf16.mxu0 %v2200_v18 }
 0x1fe   : > { %1002 = vmatmul.mubr.bf16.gmra.mrb[8].mxu1 %v2172_v19  ;;  %970 = vmatmul.mubr.bf16.gmra.mrb[40].mxu0 %v2202_v20  ;;  %v693_v19 = vld [vmem:[#allocation2 + $0x60] sm:$0xff] }
 0x1ff   : > { %1009 = vmatprep.mubr.bf16.mxu1 %v2173_v21  ;;  %977 = vmatprep.mubr.bf16.mxu0 %v2206_v22  ;;  %v685_v21 = vld [vmem:[#allocation2 + $0x20] sm:$0xff] }
 0x206   : > { %1010 = vmatmul.mubr.bf16.gmra.mrb[12].mxu1 %v2175_v23  ;;  %978 = vmatmul.mubr.bf16.gmra.mrb[44].mxu0 %v2208_v24 }
 0x207   : > { %1017 = vmatprep.mubr.bf16.mxu1 %v2176_v25 }
 0x20e   : > { %1018 = vmatmul.mubr.bf16.gmra.mrb[16].mxu1 %v2178_v26 }
 0x20f   : > { %1025 = vmatprep.mubr.bf16.mxu1 %v2179_v27  ;;  %v694_v27 = vld [vmem:[#allocation2 + $0x68] sm:$0xff] }
 0x216   : > { %1026 = vmatmul.mubr.bf16.gmra.mrb[20].mxu1 %v2181_v28 }
 0x217   : > { %1033 = vmatprep.mubr.bf16.mxu1 %v2182_v29  ;;  %v686_v29 = vld [vmem:[#allocation2 + $0x28] sm:$0xff] }
 0x21e   : > { %1034 = vmatmul.mubr.bf16.gmra.mrb[24].mxu1 %v2184_v30 }
 0x21f   : > { %1041 = vmatprep.mubr.bf16.mxu1 %v2185_v31 }
 0x226   : > { %1042 = vmatmul.mubr.bf16.gmra.mrb[28].mxu1 %v2187_v32 }
 0x227   : > { %1049 = vmatprep.mubr.bf16.mxu1 %v2191_v33 }
 0x22e   : > { %1050 = vmatmul.mubr.bf16.gmra.mrb[32].mxu1 %v2193_v34 }
 0x22f   : > { %1057 = vmatprep.mubr.bf16.mxu1 %v2197_v35 }
 0x236   : > { %1058 = vmatmul.mubr.bf16.gmra.mrb[36].mxu1 %v2199_v36 }
 0x237   : > { %1065 = vmatprep.mubr.bf16.mxu1 %v2203_v37 }
 0x23e   : > { %1066 = vmatmul.mubr.bf16.gmra.mrb[40].mxu1 %v2205_v38 }
 0x23f   : > { %1073 = vmatprep.mubr.bf16.mxu1 %v2209_v39  ;;  %v695_v39 = vld [vmem:[#allocation2 + $0x70] sm:$0xff] }
 0x246   : > { %1074 = vmatmul.mubr.bf16.gmra.mrb[44].mxu1 %v2211_v40 }
 0x2c1   : > { %v1854_v41 = vpop.f32.mrb[0].mxu1  ;;  %v1830_v42 = vpop.f32.mrb[32].mxu0 }
 0x2c2   : > { %v1855_v44 = vpop.f32.mrb[1].mxu1  ;;  %v1831_v46 = vpop.f32.mrb[33].mxu0 }
 0x2c3   : > { %v1856_v47 = vadd.f32 %v1855_v44, %v1854_v41  ;;  %v1857_v48 = vpop.f32.mrb[2].mxu1  ;;  %v1832_v49 = vadd.f32 %v1831_v46, %v1830_v42  ;;  %v1833_v50 = vpop.f32.mrb[34].mxu0  ;;  %v687_v41 = vld [vmem:[#allocation2 + $0x30] sm:$0xff] }
 0x2c4   : > { %v1858_v52 = vpop.f32.mrb[3].mxu1  ;;  %v1834_v54 = vpop.f32.mrb[35].mxu0 }
 0x2c5   : > { %v1090_v55 = vadd.f32 %v1856_v47, %v689_v43  ;;  %v1859_v56 = vadd.f32 %v1858_v52, %v1857_v48  ;;  %v1082_v57 = vadd.f32 %v1832_v49, %v681_v45  ;;  %v1835_v58 = vadd.f32 %v1834_v54, %v1833_v50  ;;  %v696_v47 = vld [vmem:[#allocation2 + $0x78] sm:$0xff] }
 0x2c6   : > { %v688_v49 = vld [vmem:[#allocation2 + $0x38] sm:$0xff] }
 0x2c7   : > { %1122 = vst [vmem:[#allocation2 + $0x40] sm:$0xff] %v1090_v55  ;;  %v1091_v59 = vadd.f32 %v1859_v56, %v690_v51  ;;  %1114 = vst [vmem:[#allocation2] sm:$0xff] %v1082_v57  ;;  %v1083_v60 = vadd.f32 %v1835_v58, %v682_v53  ;;  %v697_v58 = vld [vmem:[#allocation2 + $0x80] sm:$0xff] }
 0x2c9   : > { %1123 = vst [vmem:[#allocation2 + $0x48] sm:$0xff] %v1091_v59  ;;  %v1860_v61 = vpop.f32.mrb[4].mxu1  ;;  %1115 = vst [vmem:[#allocation2 + $0x8] sm:$0xff] %v1083_v60  ;;  %v1836_v62 = vpop.f32.mrb[36].mxu0 }
 0x2ca   : > { %v1861_v0 = vpop.f32.mrb[5].mxu1  ;;  %v1837_v2 = vpop.f32.mrb[37].mxu0 }
 0x2cb   : > { %v1862_v3 = vadd.f32 %v1861_v0, %v1860_v61  ;;  %v1863_v4 = vpop.f32.mrb[6].mxu1  ;;  %v1838_v5 = vadd.f32 %v1837_v2, %v1836_v62  ;;  %v1839_v6 = vpop.f32.mrb[38].mxu0  ;;  %v698_v62 = vld [vmem:[#allocation2 + $0x88] sm:$0xff] }
 0x2cc   : > { %v1864_v8 = vpop.f32.mrb[7].mxu1  ;;  %v1840_v10 = vpop.f32.mrb[39].mxu0 }
 0x2cd   : > { %v1092_v11 = vadd.f32 %v1862_v3, %v691_v63  ;;  %v1865_v12 = vadd.f32 %v1864_v8, %v1863_v4  ;;  %v1084_v13 = vadd.f32 %v1838_v5, %v683_v1  ;;  %v1841_v14 = vadd.f32 %v1840_v10, %v1839_v6  ;;  %v699_v4 = vld [vmem:[#allocation2 + $0x90] sm:$0xff]  ;;  %v700_v8 = vld [vmem:[#allocation2 + $0x98] sm:$0xff] }
 0x2cf   : > { %1124 = vst [vmem:[#allocation2 + $0x50] sm:$0xff] %v1092_v11  ;;  %v1093_v15 = vadd.f32 %v1865_v12, %v692_v7  ;;  %1116 = vst [vmem:[#allocation2 + $0x10] sm:$0xff] %v1084_v13  ;;  %v1085_v16 = vadd.f32 %v1841_v14, %v684_v9  ;;  %v701_v14 = vld [vmem:[#allocation2 + $0xa0] sm:$0xff] }
 0x2d1   : > { %1125 = vst [vmem:[#allocation2 + $0x58] sm:$0xff] %v1093_v15  ;;  %v1866_v17 = vpop.f32.mrb[8].mxu1  ;;  %1117 = vst [vmem:[#allocation2 + $0x18] sm:$0xff] %v1085_v16  ;;  %v1842_v18 = vpop.f32.mrb[40].mxu0 }
 0x2d2   : > { %v1867_v20 = vpop.f32.mrb[9].mxu1  ;;  %v1843_v22 = vpop.f32.mrb[41].mxu0 }
 0x2d3   : > { %v1868_v23 = vadd.f32 %v1867_v20, %v1866_v17  ;;  %v1869_v24 = vpop.f32.mrb[10].mxu1  ;;  %v1844_v25 = vadd.f32 %v1843_v22, %v1842_v18  ;;  %v1845_v26 = vpop.f32.mrb[42].mxu0  ;;  %v702_v18 = vld [vmem:[#allocation2 + $0xa8] sm:$0xff] }
 0x2d4   : > { %v1870_v28 = vpop.f32.mrb[11].mxu1  ;;  %v1846_v30 = vpop.f32.mrb[43].mxu0 }
 0x2d5   : > { %v1094_v31 = vadd.f32 %v1868_v23, %v693_v19  ;;  %v1871_v32 = vadd.f32 %v1870_v28, %v1869_v24  ;;  %v1086_v33 = vadd.f32 %v1844_v25, %v685_v21  ;;  %v1847_v34 = vadd.f32 %v1846_v30, %v1845_v26  ;;  %v703_v24 = vld [vmem:[#allocation2 + $0xb0] sm:$0xff]  ;;  %v704_v28 = vld [vmem:[#allocation2 + $0xb8] sm:$0xff] }
 0x2d7   : > { %1126 = vst [vmem:[#allocation2 + $0x60] sm:$0xff] %v1094_v31  ;;  %v1095_v35 = vadd.f32 %v1871_v32, %v694_v27  ;;  %1118 = vst [vmem:[#allocation2 + $0x20] sm:$0xff] %v1086_v33  ;;  %v1087_v36 = vadd.f32 %v1847_v34, %v686_v29  ;;  %v705_v34 = vld [vmem:[#allocation2 + $0xc0] sm:$0xff] }
 0x2d9   : > { %1127 = vst [vmem:[#allocation2 + $0x68] sm:$0xff] %v1095_v35  ;;  %v1872_v37 = vpop.f32.mrb[12].mxu1  ;;  %1119 = vst [vmem:[#allocation2 + $0x28] sm:$0xff] %v1087_v36  ;;  %v1848_v38 = vpop.f32.mrb[44].mxu0 }
 0x2da   : > { %v1873_v40 = vpop.f32.mrb[13].mxu1  ;;  %v1849_v42 = vpop.f32.mrb[45].mxu0 }
 0x2db   : > { %v1874_v43 = vadd.f32 %v1873_v40, %v1872_v37  ;;  %v1875_v44 = vpop.f32.mrb[14].mxu1  ;;  %v1850_v45 = vadd.f32 %v1849_v42, %v1848_v38  ;;  %v1851_v46 = vpop.f32.mrb[46].mxu0  ;;  %v706_v38 = vld [vmem:[#allocation2 + $0xc8] sm:$0xff] }
 0x2dc   : > { %v1876_v48 = vpop.f32.mrb[15].mxu1  ;;  %v1852_v50 = vpop.f32.mrb[47].mxu0 }
 0x2dd   : > { %v1096_v51 = vadd.f32 %v1874_v43, %v695_v39  ;;  %v1877_v52 = vadd.f32 %v1876_v48, %v1875_v44  ;;  %v1088_v53 = vadd.f32 %v1850_v45, %v687_v41  ;;  %v1853_v54 = vadd.f32 %v1852_v50, %v1851_v46  ;;  %v707_v44 = vld [vmem:[#allocation2 + $0xd0] sm:$0xff]  ;;  %v708_v48 = vld [vmem:[#allocation2 + $0xd8] sm:$0xff] }
 0x2df   : > { %1128 = vst [vmem:[#allocation2 + $0x70] sm:$0xff] %v1096_v51  ;;  %v1097_v55 = vadd.f32 %v1877_v52, %v696_v47  ;;  %1120 = vst [vmem:[#allocation2 + $0x30] sm:$0xff] %v1088_v53  ;;  %v1089_v56 = vadd.f32 %v1853_v54, %v688_v49  ;;  %v709_v54 = vld [vmem:[#allocation2 + $0xe0] sm:$0xff] }
 0x2e1   : > { %1129 = vst [vmem:[#allocation2 + $0x78] sm:$0xff] %v1097_v55  ;;  %v1878_v57 = vpop.f32.mrb[16].mxu1  ;;  %1121 = vst [vmem:[#allocation2 + $0x38] sm:$0xff] %v1089_v56 }
 0x2e2   : > { %v1879_v59 = vpop.f32.mrb[17].mxu1 }
 0x2e3   : > { %v1880_v60 = vadd.f32 %v1879_v59, %v1878_v57  ;;  %v1881_v61 = vpop.f32.mrb[18].mxu1 }
 0x2e4   : > { %v1882_v63 = vpop.f32.mrb[19].mxu1 }
 0x2e5   : > { %v1098_v0 = vadd.f32 %v1880_v60, %v697_v58  ;;  %v1883_v1 = vadd.f32 %v1882_v63, %v1881_v61  ;;  %v710_v58 = vld [vmem:[#allocation2 + $0xe8] sm:$0xff] }
 0x2e7   : > { %1130 = vst [vmem:[#allocation2 + $0x80] sm:$0xff] %v1098_v0  ;;  %v1099_v2 = vadd.f32 %v1883_v1, %v698_v62  ;;  %v711_v0 = vld [vmem:[#allocation2 + $0xf0] sm:$0xff] }
 0x2e9   : > { %1131 = vst [vmem:[#allocation2 + $0x88] sm:$0xff] %v1099_v2  ;;  %v1884_v3 = vpop.f32.mrb[20].mxu1 }
 0x2ea   : > { %v1885_v5 = vpop.f32.mrb[21].mxu1 }
 0x2eb   : > { %v1886_v6 = vadd.f32 %v1885_v5, %v1884_v3  ;;  %v1887_v7 = vpop.f32.mrb[22].mxu1 }
 0x2ec   : > { %v1888_v9 = vpop.f32.mrb[23].mxu1 }
 0x2ed   : > { %v1100_v10 = vadd.f32 %v1886_v6, %v699_v4  ;;  %v1889_v11 = vadd.f32 %v1888_v9, %v1887_v7  ;;  %v712_v4 = vld [vmem:[#allocation2 + $0xf8] sm:$0xff]  ;;  %v1150_v9 = vld [vmem:[#allocation2] sm:$0xff] (!%p1621_p5) }
 0x2ef   : > { %1132 = vst [vmem:[#allocation2 + $0x90] sm:$0xff] %v1100_v10  ;;  %v1101_v12 = vadd.f32 %v1889_v11, %v700_v8  ;;  %v1151_v10 = vld [vmem:[#allocation2 + $0x8] sm:$0xff] (!%p1621_p5)  ;;  %v2841_v11 = vld [vmem:[%s3043_s15] ss:$0 sm:$0xff] (!%p1621_p5) }
 0x2f1   : > { %1133 = vst [vmem:[#allocation2 + $0x98] sm:$0xff] %v1101_v12  ;;  %v1890_v13 = vpop.f32.mrb[24].mxu1  ;;  %v1189_v12 = vadd.f32 (!%p1621_p5), %v2841_v11, %v1150_v9 }
 0x2f2   : > { %v1891_v15 = vpop.f32.mrb[25].mxu1 }
 0x2f3   : > { %v1892_v16 = vadd.f32 %v1891_v15, %v1890_v13  ;;  %v1893_v17 = vpop.f32.mrb[26].mxu1  ;;  %v1190_v13 = vadd.f32 (!%p1621_p5), %v2841_v11, %v1151_v10  ;;  %v1153_v15 = vld [vmem:[#allocation2 + $0x18] sm:$0xff] (!%p1621_p5) }
 0x2f4   : > { %v1894_v19 = vpop.f32.mrb[27].mxu1 }
 0x2f5   : > { %v1102_v20 = vadd.f32 %v1892_v16, %v701_v14  ;;  %v1895_v21 = vadd.f32 %v1894_v19, %v1893_v17  ;;  %v1152_v14 = vld [vmem:[#allocation2 + $0x10] sm:$0xff] (!%p1621_p5)  ;;  %v1154_v16 = vld [vmem:[#allocation2 + $0x20] sm:$0xff] (!%p1621_p5)  ;;  %v1155_v19 = vld [vmem:[#allocation2 + $0x28] sm:$0xff] (!%p1621_p5) }
 0x2f6   : > { %v1191_v17 = vadd.f32 (!%p1621_p5), %v2841_v11, %v1152_v14 }
 0x2f7   : > { %1134 = vst [vmem:[#allocation2 + $0xa0] sm:$0xff] %v1102_v20  ;;  %v1103_v22 = vadd.f32 %v1895_v21, %v702_v18  ;;  %v1192_v18 = vadd.f32 (!%p1621_p5), %v2841_v11, %v1153_v15  ;;  %v1193_v20 = vadd.f32 (!%p1621_p5), %v2841_v11, %v1154_v16  ;;  %v1156_v21 = vld [vmem:[#allocation2 + $0x30] sm:$0xff] (!%p1621_p5) }
 0x2f9   : > { %1135 = vst [vmem:[#allocation2 + $0xa8] sm:$0xff] %v1103_v22  ;;  %v1896_v23 = vpop.f32.mrb[28].mxu1  ;;  %v1157_v22 = vld [vmem:[#allocation2 + $0x38] sm:$0xff] (!%p1621_p5) }
 0x2fa   : > { %v1897_v25 = vpop.f32.mrb[29].mxu1 }
 0x2fb   : > { %v1898_v26 = vadd.f32 %v1897_v25, %v1896_v23  ;;  %v1899_v27 = vpop.f32.mrb[30].mxu1  ;;  %v1221_v23 = vmax.f32 (!%p1621_p5), %v1189_v12, 0.0  ;;  %v1194_v25 = vadd.f32 (!%p1621_p5), %v2841_v11, %v1155_v19 }
 0x2fc   : > { %v1900_v29 = vpop.f32.mrb[31].mxu1 }
 0x2fd   : > { %v1104_v30 = vadd.f32 %v1898_v26, %v703_v24  ;;  %v1901_v31 = vadd.f32 %v1900_v29, %v1899_v27  ;;  %v1222_v24 = vmax.f32 (!%p1621_p5), %v1190_v13, 0.0  ;;  %v1195_v26 = vadd.f32 (!%p1621_p5), %v2841_v11, %v1156_v21  ;;  %v1158_v27 = vld [vmem:[#allocation2 + $0x40] sm:$0xff] (!%p1621_p5)  ;;  %v1160_v29 = vld [vmem:[#allocation2 + $0x50] sm:$0xff] (!%p1621_p5) }
 0x2ff   : > { %1136 = vst [vmem:[#allocation2 + $0xb0] sm:$0xff] %v1104_v30  ;;  %v1105_v32 = vadd.f32 %v1901_v31, %v704_v28  ;;  %v1159_v28 = vld [vmem:[#allocation2 + $0x48] sm:$0xff] (!%p1621_p5)  ;;  %v1223_v30 = vmax.f32 (!%p1621_p5), %v1191_v17, 0.0  ;;  %v1224_v31 = vmax.f32 (!%p1621_p5), %v1192_v18, 0.0 }
 0x301   : > { %1137 = vst [vmem:[#allocation2 + $0xb8] sm:$0xff] %v1105_v32  ;;  %v1902_v33 = vpop.f32.mrb[32].mxu1  ;;  %v1225_v32 = vmax.f32 (!%p1621_p5), %v1193_v20, 0.0 }
 0x302   : > { %v1903_v35 = vpop.f32.mrb[33].mxu1 }
 0x303   : > { %v1904_v36 = vadd.f32 %v1903_v35, %v1902_v33  ;;  %v1905_v37 = vpop.f32.mrb[34].mxu1  ;;  %v1196_v33 = vadd.f32 (!%p1621_p5), %v2841_v11, %v1157_v22  ;;  %v1162_v35 = vld [vmem:[#allocation2 + $0x60] sm:$0xff] (!%p1621_p5) }
 0x304   : > { %v1906_v39 = vpop.f32.mrb[35].mxu1 }
 0x305   : > { %v1106_v40 = vadd.f32 %v1904_v36, %v705_v34  ;;  %v1907_v41 = vadd.f32 %v1906_v39, %v1905_v37  ;;  %v1161_v34 = vld [vmem:[#allocation2 + $0x58] sm:$0xff] (!%p1621_p5)  ;;  %v1698_v36 = vpack.c.bf16 (!%p1621_p5), %v1222_v24, %v1221_v23  ;;  %v1226_v37 = vmax.f32 (!%p1621_p5), %v1194_v25, 0.0 }
 0x306   : > { %v1197_v39 = vadd.f32 (!%p1621_p5), %v2841_v11, %v1158_v27  ;;  %v1172_v9 = vld [vmem:[#allocation2 + $0xb0] sm:$0xff] (!%p1621_p5) }
 0x307   : > { %1138 = vst [vmem:[#allocation2 + $0xc0] sm:$0xff] %v1106_v40  ;;  %v1107_v42 = vadd.f32 %v1907_v41, %v706_v38  ;;  %v1227_v38 = vmax.f32 (!%p1621_p5), %v1195_v26, 0.0  ;;  %v1163_v40 = vld [vmem:[#allocation2 + $0x68] sm:$0xff] (!%p1621_p5)  ;;  %v1703_v41 = vpack.c.bf16 (!%p1621_p5), %v1224_v31, %v1223_v30  ;;  %1699 = vst [vmem:[%s2786_s9] sm:$0xff] (!%p1621_p5), %v1698_v36   ;;  %v1211_v25 = vadd.f32 (!%p1621_p5), %v2841_v11, %v1172_v9 }
 0x308   : > { %v1173_v10 = vld [vmem:[#allocation2 + $0xb8] sm:$0xff] (!%p1621_p5) }
 0x309   : > { %1139 = vst [vmem:[#allocation2 + $0xc8] sm:$0xff] %v1107_v42  ;;  %v1908_v43 = vpop.f32.mrb[36].mxu1  ;;  %v1228_v42 = vmax.f32 (!%p1621_p5), %v1196_v33, 0.0  ;;  %1775 = vst [vmem:[%s2786_s9 + $0x8] sm:$0xff] (!%p1621_p5), %v1703_v41   ;;  %v1212_v26 = vadd.f32 (!%p1621_p5), %v2841_v11, %v1173_v10 }
 0x30a   : > { %v1909_v45 = vpop.f32.mrb[37].mxu1 }
 0x30b   : > { %v1910_v46 = vadd.f32 %v1909_v45, %v1908_v43  ;;  %v1911_v47 = vpop.f32.mrb[38].mxu1  ;;  %v1198_v43 = vadd.f32 (!%p1621_p5), %v2841_v11, %v1159_v28  ;;  %v1164_v45 = vld [vmem:[#allocation2 + $0x70] sm:$0xff] (!%p1621_p5)  ;;  %v1244_v36 = vmax.f32 (!%p1621_p5), %v1212_v26, 0.0 }
 0x30c   : > { %v1912_v49 = vpop.f32.mrb[39].mxu1 }
 0x30d   : > { %v1108_v50 = vadd.f32 %v1910_v46, %v707_v44  ;;  %v1913_v51 = vadd.f32 %v1912_v49, %v1911_v47  ;;  %v1199_v44 = vadd.f32 (!%p1621_p5), %v2841_v11, %v1160_v29  ;;  %v1165_v46 = vld [vmem:[#allocation2 + $0x78] sm:$0xff] (!%p1621_p5)  ;;  %v1708_v47 = vpack.c.bf16 (!%p1621_p5), %v1226_v37, %v1225_v32 }
 0x30e   : > { %v1200_v49 = vadd.f32 (!%p1621_p5), %v2841_v11, %v1161_v34  ;;  %v1174_v16 = vld [vmem:[#allocation2 + $0xc0] sm:$0xff] (!%p1621_p5) }
 0x30f   : > { %1140 = vst [vmem:[#allocation2 + $0xd0] sm:$0xff] %v1108_v50  ;;  %v1109_v52 = vadd.f32 %v1913_v51, %v708_v48  ;;  %v1229_v48 = vmax.f32 (!%p1621_p5), %v1197_v39, 0.0  ;;  %v1201_v50 = vadd.f32 (!%p1621_p5), %v2841_v11, %v1162_v35  ;;  %v1166_v51 = vld [vmem:[#allocation2 + $0x80] sm:$0xff] (!%p1621_p5)  ;;  %1776 = vst [vmem:[%s2786_s9 + $0x10] sm:$0xff] (!%p1621_p5), %v1708_v47   ;;  %v1213_v30 = vadd.f32 (!%p1621_p5), %v2841_v11, %v1174_v16 }
 0x310   : > { %v1175_v17 = vld [vmem:[#allocation2 + $0xc8] sm:$0xff] (!%p1621_p5)  ;;  %v1243_v35 = vmax.f32 (!%p1621_p5), %v1211_v25, 0.0 }
 0x311   : > { %1141 = vst [vmem:[#allocation2 + $0xd8] sm:$0xff] %v1109_v52  ;;  %v1914_v53 = vpop.f32.mrb[40].mxu1  ;;  %v1167_v52 = vld [vmem:[#allocation2 + $0x88] sm:$0xff] (!%p1621_p5)  ;;  %v1214_v31 = vadd.f32 (!%p1621_p5), %v2841_v11, %v1175_v17  ;;  %v1245_v41 = vmax.f32 (!%p1621_p5), %v1213_v30, 0.0 }
 0x312   : > { %v1915_v55 = vpop.f32.mrb[41].mxu1 }
 0x313   : > { %v1916_v56 = vadd.f32 %v1915_v55, %v1914_v53  ;;  %v1917_v57 = vpop.f32.mrb[42].mxu1  ;;  %v1713_v53 = vpack.c.bf16 (!%p1621_p5), %v1228_v42, %v1227_v38  ;;  %v1231_v55 = vmax.f32 (!%p1621_p5), %v1199_v44, 0.0  ;;  %v1246_v42 = vmax.f32 (!%p1621_p5), %v1214_v31, 0.0 }
 0x314   : > { %v1918_v59 = vpop.f32.mrb[43].mxu1  ;;  %v1753_v44 = vpack.c.bf16 (!%p1621_p5), %v1244_v36, %v1243_v35 }
 0x315   : > { %v1110_v60 = vadd.f32 %v1916_v56, %v709_v54  ;;  %v1919_v61 = vadd.f32 %v1918_v59, %v1917_v57  ;;  %v1230_v54 = vmax.f32 (!%p1621_p5), %v1198_v43, 0.0  ;;  %v1202_v56 = vadd.f32 (!%p1621_p5), %v2841_v11, %v1163_v40  ;;  %v1168_v57 = vld [vmem:[#allocation2 + $0x90] sm:$0xff] (!%p1621_p5)  ;;  %1777 = vst [vmem:[%s2786_s9 + $0x18] sm:$0xff] (!%p1621_p5), %v1713_v53  }
 0x316   : > { %v1233_v59 = vmax.f32 (!%p1621_p5), %v1201_v50, 0.0  ;;  %v1176_v22 = vld [vmem:[#allocation2 + $0xd0] sm:$0xff] (!%p1621_p5)  ;;  %1785 = vst [vmem:[%s2786_s9 + $0x58] sm:$0xff] (!%p1621_p5), %v1753_v44  }
 0x317   : > { %1142 = vst [vmem:[#allocation2 + $0xe0] sm:$0xff] %v1110_v60  ;;  %v1111_v62 = vadd.f32 %v1919_v61, %v710_v58  ;;  %v1232_v58 = vmax.f32 (!%p1621_p5), %v1200_v49, 0.0  ;;  %v1203_v60 = vadd.f32 (!%p1621_p5), %v2841_v11, %v1164_v45  ;;  %v1204_v61 = vadd.f32 (!%p1621_p5), %v2841_v11, %v1165_v46 }
 0x318   : > { %v1177_v27 = vld [vmem:[#allocation2 + $0xd8] sm:$0xff] (!%p1621_p5)  ;;  %v1215_v37 = vadd.f32 (!%p1621_p5), %v2841_v11, %v1176_v22 }
 0x319   : > { %1143 = vst [vmem:[#allocation2 + $0xe8] sm:$0xff] %v1111_v62  ;;  %v1920_v63 = vpop.f32.mrb[44].mxu1  ;;  %v1169_v62 = vld [vmem:[#allocation2 + $0x98] sm:$0xff] (!%p1621_p5)  ;;  %v1216_v43 = vadd.f32 (!%p1621_p5), %v2841_v11, %v1177_v27 }
 0x31a   : > { %v1921_v1 = vpop.f32.mrb[45].mxu1  ;;  %v1208_v15 = vadd.f32 (!%p1621_p5), %v2841_v11, %v1169_v62  ;;  %v1247_v45 = vmax.f32 (!%p1621_p5), %v1215_v37, 0.0 }
 0x31b   : > { %v1922_v2 = vadd.f32 %v1921_v1, %v1920_v63  ;;  %v1923_v3 = vpop.f32.mrb[46].mxu1  ;;  %1149 = sbr.rel (%p1621_p5) target bundleno = 816 (0x330), region = 56  ;;  %v1718_v63 = vpack.c.bf16 (!%p1621_p5), %v1230_v54, %v1229_v48  ;;  %v1205_v1 = vadd.f32 (!%p1621_p5), %v2841_v11, %v1166_v51  ;;  %v1758_v48 = vpack.c.bf16 (!%p1621_p5), %v1246_v42, %v1245_v41 }
 0x31c   : > { %v1924_v5 = vpop.f32.mrb[47].mxu1  ;;  %v1240_v24 = vmax.f32 (!%p1621_p5), %v1208_v15, 0.0  ;;  %v1248_v49 = vmax.f32 (!%p1621_p5), %v1216_v43, 0.0 }
 0x31d   : > { %v1112_v6 = vadd.f32 %v1922_v2, %v711_v0  ;;  %v1925_v7 = vadd.f32 %v1924_v5, %v1923_v3  ;;  %v1234_v0 = vmax.f32 (!%p1621_p5), %v1202_v56, 0.0  ;;  %v1206_v2 = vadd.f32 (!%p1621_p5), %v2841_v11, %v1167_v52  ;;  %v1170_v3 = vld [vmem:[#allocation2 + $0xa0] sm:$0xff] (!%p1621_p5)  ;;  %1778 = vst [vmem:[%s2786_s9 + $0x20] sm:$0xff] (!%p1621_p5), %v1718_v63   ;;  %1786 = vst [vmem:[%s2786_s9 + $0x60] sm:$0xff] (!%p1621_p5), %v1758_v48  }
 0x31e   : > { %v1723_v5 = vpack.c.bf16 (!%p1621_p5), %v1232_v58, %v1231_v55  ;;  %v1237_v13 = vmax.f32 (!%p1621_p5), %v1205_v1, 0.0  ;;  %v1209_v20 = vadd.f32 (!%p1621_p5), %v2841_v11, %v1170_v3  ;;  %v1178_v32 = vld [vmem:[#allocation2 + $0xe0] sm:$0xff] (!%p1621_p5)  ;;  %v1763_v54 = vpack.c.bf16 (!%p1621_p5), %v1248_v49, %v1247_v45 }
 0x31f   : > { %1144 = vst [vmem:[#allocation2 + $0xf0] sm:$0xff] %v1112_v6  ;;  %v1113_v8 = vadd.f32 %v1925_v7, %v712_v4  ;;  %v1171_v4 = vld [vmem:[#allocation2 + $0xa8] sm:$0xff] (!%p1621_p5)  ;;  %v1235_v6 = vmax.f32 (!%p1621_p5), %v1203_v60, 0.0  ;;  %v1236_v7 = vmax.f32 (!%p1621_p5), %v1204_v61, 0.0  ;;  %v1728_v12 = vpack.c.bf16 (!%p1621_p5), %v1234_v0, %v1233_v59 }
 0x320   : > { %v1238_v14 = vmax.f32 (!%p1621_p5), %v1206_v2, 0.0  ;;  %1779 = vst [vmem:[%s2786_s9 + $0x28] sm:$0xff] (!%p1621_p5), %v1723_v5   ;;  %v1210_v21 = vadd.f32 (!%p1621_p5), %v2841_v11, %v1171_v4  ;;  %v1241_v28 = vmax.f32 (!%p1621_p5), %v1209_v20, 0.0  ;;  %v1179_v33 = vld [vmem:[#allocation2 + $0xe8] sm:$0xff] (!%p1621_p5)  ;;  %v1217_v46 = vadd.f32 (!%p1621_p5), %v2841_v11, %v1178_v32  ;;  %1787 = vst [vmem:[%s2786_s9 + $0x68] sm:$0xff] (!%p1621_p5), %v1763_v54  }
 0x321   : > { %1145 = vst [vmem:[#allocation2 + $0xf8] sm:$0xff] %v1113_v8  ;;  %v1207_v8 = vadd.f32 (!%p1621_p5), %v2841_v11, %v1168_v57  ;;  %v1733_v18 = vpack.c.bf16 (!%p1621_p5), %v1236_v7, %v1235_v6  ;;  %1780 = vst [vmem:[%s2786_s9 + $0x30] sm:$0xff] (!%p1621_p5), %v1728_v12   ;;  %v1218_v47 = vadd.f32 (!%p1621_p5), %v2841_v11, %v1179_v33 }
 0x322   : > { %v1738_v23 = vpack.c.bf16 %v1238_v14, %v1237_v13  ;;  %v1242_v29 = vmax.f32 %v1210_v21, 0.0  ;;  %v1249_v52 = vmax.f32 %v1217_v46, 0.0 }
 0x323   : > { %v1239_v19 = vmax.f32 %v1207_v8, 0.0  ;;  %1781 = vst [vmem:[%s2786_s9 + $0x38] sm:$0xff] %v1733_v18   ;;  %v1250_v53 = vmax.f32 %v1218_v47, 0.0 }
 0x324   : > { %1782 = vst [vmem:[%s2786_s9 + $0x40] sm:$0xff] %v1738_v23   ;;  %v1748_v40 = vpack.c.bf16 %v1242_v29, %v1241_v28 }
 0x325   : > { %v1743_v34 = vpack.c.bf16 %v1240_v24, %v1239_v19  ;;  %v1768_v57 = vpack.c.bf16 %v1250_v53, %v1249_v52 }
 0x326   : > { %v1180_v38 = vld [vmem:[#allocation2 + $0xf0] sm:$0xff]  ;;  %1784 = vst [vmem:[%s2786_s9 + $0x50] sm:$0xff] %v1748_v40  }
 0x327   : > { %1783 = vst [vmem:[%s2786_s9 + $0x48] sm:$0xff] %v1743_v34   ;;  %v1219_v50 = vadd.f32 %v2841_v11, %v1180_v38  ;;  %1788 = vst [vmem:[%s2786_s9 + $0x70] sm:$0xff] %v1768_v57  }
 0x328   : > { %v1181_v39 = vld [vmem:[#allocation2 + $0xf8] sm:$0xff] }
 0x329   : > { %v1220_v51 = vadd.f32 %v2841_v11, %v1181_v39  ;;  %v1251_v55 = vmax.f32 %v1219_v50, 0.0 }
 0x32b   : > { %v1252_v56 = vmax.f32 %v1220_v51, 0.0 }
 0x32d   : > { %v1773_v58 = vpack.c.bf16 %v1252_v56, %v1251_v55 }
 0x32f   : > { %1789 = vst [vmem:[%s2786_s9 + $0x78] sm:$0xff] %v1773_v58  }
 0x330 PF: > { %s3044_s14 = sld [smem:[#allocation17_spill]]  ;;  %s3046_s13 = sld [smem:[#allocation20_spill]] }
 0x331   : > { %s3047_s21 = sld [smem:[#allocation26_spill]]  ;;  %s1427_s6 = sshll.u32 %s2786_s9, 4  ;;  %s2898_s6 = int_to_ptr.vmem [resolvable:$true] %s1427_s6 }
 0x332   : > { %s2902_s5 = scalar_lea.sflag [#allocation5], %s284_s16  ;;  %s2300_s30 = scalar_lea.vmem %s2898_s6, 2048 }
 0x333   : > { %p2301_p2 = scmp.ne.s32.totalorder %s2898_s6, %s2300_s30  ;;  %s2465_s12 = smov [#allocation9]  }
 0x334   : > { %s2304_s24 = sshll.u32 %s2465_s12, 4  ;;  %s2305_s24 = int_to_ptr.vmem [resolvable:$false] %s2304_s24 }
 0x335   : > { %s2306_s3 = scalar_lea.vmem %s2305_s24, 4096  ;;  %p2307_p4 = scmp.lt.s32.totalorder %s2898_s6, %s2305_s24 }
 0x336   : > { %s1694_s29 = sshll.u32 %s3044_s14, 11  ;;  %p3049_p10 = scmp.ne.s32.totalorder %s3046_s13, 0 }
 0x337   : > { %s3048_s10 = smov %s3047_s21  ;;  %s2895_s2 = scalar_lea.hbm %s3047_s21, %s1694_s29 }
 0x338   : > { %p2302_p7 = pnand %p2301_p2, %p3049_p10  ;;  %p2308_p8 = scmp.lt.s32.totalorder %s2306_s3, %s2300_s30 }
 0x33a   : > { %p2303_p11 = pneg %p2302_p7  ;;  %p2309_p12 = por %p2308_p8, %p2307_p4 }
 0x33c   : > { %p2310_p13 = pnand %p2309_p12, %p2303_p11 }
 0x33e   : > { %2313 = shalt.err (!%p2310_p13)
}
 0x33f   : > { %s2314_s16 = scalar_lea.hbm %s2895_s2, 2048  ;;  %s2318_s14 = scalar_lea.hbm %s3048_s10, 4096 }
 0x340   : > { %p2315_p6 = scmp.ne.s32.totalorder %s2895_s2, %s2314_s16  ;;  %p2319_p3 = scmp.lt.u32.totalorder %s2895_s2, %s3048_s10 }
 0x341   : > { %p2320_p9 = scmp.lt.u32.totalorder %s2318_s14, %s2314_s16  ;;  %p2322_p2 = scmp.lt.u32.totalorder %s2314_s16, %s2895_s2 }
 0x342   : > { %p2316_p0 = pnand %p2315_p6, %p3049_p10 }
 0x343   : > { %p2321_p5 = por %p2320_p9, %p2319_p3 }
 0x344   : > { %p2317_p1 = pneg %p2316_p0 }
 0x345   : > { %p2323_p7 = por %p2322_p2, %p2321_p5 }
 0x347   : > { %p2324_p11 = pnand %p2323_p7, %p2317_p1 }
 0x349   : > { %2327 = shalt.err (!%p2324_p11)
}
 0x34a   : > { %s2466_s8 = smov 64   ;;  %s2467_s11 = smov 4  }
 0x34b   : > { %1998 = dma.vmem_to_hbm [thread:$0]  (%p3049_p10), %s2898_s6, 2048, %s2895_s2, %s2902_s5, %s2466_s8, %s2466_s8, %s2467_s11  }
 0x34c PF: > { %s3050_s21 = sld [smem:[#allocation14_spill]]  ;;  %s3051_s30 = sld [smem:[#allocation21_spill]] }
 0x34d   : > { %p2018_p4 = scmp.ge.s32.totalorder %s2454_s28, 2 }
 0x352   : > { %s1442_s12 = sand.u32 1, %s3050_s21   ;;  %p3052_p8 = scmp.ne.s32.totalorder %s3051_s30, 0 }
 0x353   : > { %s1443_s24 = scalar_lea.sflag [#allocation5], %s1442_s12 }
 0x354   : > { %p2012_p12 = pnand %p2018_p4, %p3052_p8 }
 0x356   : > { %2397 = dma.done.wait (!%p2012_p12), %s1443_s24, 2048  }
 0x357   : > { %2399 = vsyncadd (!%p2012_p12), %s1443_s24, 4294965248  ;;  %s23_s28 = sadd.s32 1, %s2454_s28   ;;  %s3054_s15 = sld [smem:[#allocation15_spill]] }
 0x358   : > { %p2931_p13 = scmp.ge.s32.totalorder %s23_s28, 6   ;;  %s3055_s13 = sld [smem:[#allocation22_spill]] }
 0x359   : > { %s3056_s2 = sld [smem:[#allocation23_spill]]  ;;  %s3057_s16 = smov %s2410_s17 }
 0x35a   : > { %s3058_s17 = smov %s2656_s18  ;;  %s3059_s18 = smov %s2418_s19 }
 0x35b   : > { %s3060_s19 = smov %s2422_s20  ;;  %s3061_s20 = smov %s2712_s7 }
 0x35c   : > { %s3062_s21 = smov %s2430_s22  ;;  %s3063_s22 = smov %s2434_s23 }
 0x35d   : > { %s3064_s23 = smov %s2659_s4  ;;  %s3065_s24 = smov %s2446_s26 }
 0x35e   : > { %s3066_s25 = smov %s2450_s27  ;;  %s3067_s26 = smov %s3055_s13 }
 0x35f   : > { %s3068_s27 = smov %s3056_s2  ;;  %22 = sbr.rel (!%p2931_p13) target bundleno = 16 (0x10), region = 106 }
 0x366   :  { %1448 = vsyncpa [#allocation4], 1 }
 0x367   :  { %1450 = vsyncpa [#allocation4 + $0x1], 1 }
 0x368   :  { %1451 = vsyncpa [#allocation7], 1 }
 0x369   :  { %1453 = vsyncpa [#allocation7 + $0x1], 1 }
 0x36a   :  { %1454 = vsyncpa [#allocation5], 1 }
 0x36b   :  { %1456 = vsyncpa [#allocation5 + $0x1], 1 }

</bundles_post_ra>
